<compile_context>
chip_gen: v5e
topology: v5e:2x2
jax: 0.10.0
libtpu: 0.0.40
codegen_flags: <defaults>
</compile_context>

<pallas_src>
import functools

import jax
import jax.numpy as jnp
from jax.experimental import pallas as pl
from jax.experimental.pallas import tpu as pltpu


_NEG_INF = -1e30  # finite "-inf": identical softmax for non-degenerate rows, no NaN


def _make_attention_kernel(has_mask, dsrc, din):
    """Build the kernel, specialised on mask presence and the static dims."""

    def kernel(*refs):
        if has_mask:
            (inp_ref, src_ref, mask_ref, w_in_ref, w_out_ref,
             out_ref, attn_ref, x_sc, m_sc, l_sc, acc_sc) = refs
        else:
            (inp_ref, src_ref, w_in_ref, w_out_ref,
             out_ref, attn_ref, x_sc, m_sc, l_sc, acc_sc) = refs
            mask_ref = None

        si = pl.program_id(1)  # source-tile index (reduction axis)

        @pl.when(si == 0)
        def _init():
            # input projection (Linear, no bias): x = input @ W_in^T -> (TB, Dsrc)
            x2 = jax.lax.dot_general(
                inp_ref[...], w_in_ref[...],
                dimension_numbers=(((1,), (1,)), ((), ())),
                preferred_element_type=jnp.float32)
            x_sc[...] = x2[:, None, :]                       # (TB, 1, Dsrc)
            m_sc[...] = jnp.full_like(m_sc, _NEG_INF)
            l_sc[...] = jnp.zeros_like(l_sc)
            acc_sc[...] = jnp.zeros_like(acc_sc)

        src = src_ref[...]                                   # (TB, TS, Dsrc)

        # attn_scores tile: sum_d x[b,d] * src[b,s,d]  -> (TB, 1, TS)   [MXU]
        scores = jnp.einsum('bqd,bsd->bqs',
                            x_sc[...].astype(src.dtype), src,
                            preferred_element_type=jnp.float32)

        if has_mask:
            pad = mask_ref[0]                                # (TB, 1, TS); 1.0 == padded
            scores = jnp.where(pad > 0.5, _NEG_INF, scores)

        # stash raw (masked) scores; normalised into probabilities at the end
        attn_ref[si] = scores

        # ---- online softmax over the source-length axis ----
        m_prev = m_sc[...]                                   # (TB, 1, 1)
        m_new = jnp.maximum(m_prev, jnp.max(scores, axis=2, keepdims=True))
        alpha = jnp.exp(m_prev - m_new)
        p = jnp.exp(scores - m_new)                          # (TB, 1, TS)
        l_sc[...] = alpha * l_sc[...] + jnp.sum(p, axis=2, keepdims=True)
        # context partial: sum_s p[b,s] * src[b,s,d] -> (TB, 1, Dsrc)    [MXU]
        acc_sc[...] = alpha * acc_sc[...] + jnp.einsum(
            'bqs,bsd->bqd', p.astype(src.dtype), src,
            preferred_element_type=jnp.float32)
        m_sc[...] = m_new

        @pl.when(si == pl.num_programs(1) - 1)
        def _finalize():
            inv_l = pl.reciprocal(l_sc[...], approx=False)   # (TB, 1, 1)
            ctx = (acc_sc[...] * inv_l)[:, 0, :]             # (TB, Dsrc)
            # output projection of concat([ctx, input]): split W_out by static slices
            w_ctx = w_out_ref[:, 0:dsrc]                     # (Dout, Dsrc)
            w_inp = w_out_ref[:, dsrc:dsrc + din]            # (Dout, Din)
            y = jax.lax.dot_general(
                ctx, w_ctx, dimension_numbers=(((1,), (1,)), ((), ())),
                preferred_element_type=jnp.float32)
            y = y + jax.lax.dot_general(
                inp_ref[...], w_inp, dimension_numbers=(((1,), (1,)), ((), ())),
                preferred_element_type=jnp.float32)
            out_ref[...] = jnp.tanh(y).astype(out_ref.dtype)
            # softmax-normalise the stashed scores over the full source length
            s_all = attn_ref[...]                            # (n_tiles, TB, 1, TS)
            attn_ref[...] = jnp.exp(s_all - m_sc[...]) * inv_l

    return kernel


def _choose_source_tile(S, tb, dsrc, itemsize, budget_bytes):
    """Largest multiple-of-8 divisor of S whose double-buffered src tile fits budget."""
    max_ts = max(8, budget_bytes // (2 * tb * dsrc * itemsize))
    if S <= max_ts:
        return S
    best = S  # fallback: whole S in one tile (correct, may exceed budget)
    t = 8
    while t <= max_ts:
        if S % t == 0:
            best = t
        t += 8
    return best


def attention_layer_pallas(inp, source_hids, padding_mask, w_in, w_out,
                           *, ts=None, tb=None,
                           src_tile_budget_bytes=8 << 20,
                           vmem_limit_bytes=None):
    """
    inp:          (B, Din)      float32
    source_hids:  (S, B, Dsrc)  float32 (or bfloat16 for a bandwidth-bound path)
    padding_mask: (S, B) bool (True == padded) or None
    w_in:         (Dsrc, Din)        input_proj.weight
    w_out:        (Dout, Dsrc+Din)   output_proj.weight  (concat order: [ctx, input])
    returns: (out (B, Dout), attn_scores (S, B))
    """
    inp = jnp.asarray(inp, jnp.float32)
    source_hids = jnp.asarray(source_hids)
    w_in = jnp.asarray(w_in, jnp.float32)
    w_out = jnp.asarray(w_out, jnp.float32)

    B, din = inp.shape
    S, b2, dsrc = source_hids.shape
    assert b2 == B
    dout = w_out.shape[0]
    assert w_in.shape == (dsrc, din)
    assert w_out.shape == (dout, dsrc + din)

    # batch tile: split into >=2 sublane-aligned blocks when possible so the
    # "parallel" grid axis has real work for v7x's 2 TensorCores.
    if tb is None:
        tb = B // 2 if (B % 16 == 0) else B
    assert B % tb == 0 and (tb % 8 == 0 or tb == B)

    itemsize = jnp.dtype(source_hids.dtype).itemsize
    if ts is None:
        ts = _choose_source_tile(S, tb, dsrc, itemsize, src_tile_budget_bytes)
    assert S % ts == 0 and (ts % 8 == 0 or ts == S)
    n_tiles = S // ts
    nb = B // tb

    # Layout plumbing (plain XLA, outside the kernel): batch-major source
    # states so in-kernel matmuls are the proven leading-batch einsum form.
    # TODO(synk): accept batch-major encoder states directly to skip this
    # transpose on the hot path (it is loop-invariant across decoder steps).
    src_b = jnp.transpose(source_hids, (1, 0, 2))            # (B, S, Dsrc)

    has_mask = padding_mask is not None
    inputs = [inp, src_b]
    in_specs = [
        pl.BlockSpec((tb, din), lambda bi, si: (bi, 0)),
        pl.BlockSpec((tb, ts, dsrc), lambda bi, si: (bi, si, 0)),
    ]
    if has_mask:
        mask4 = (jnp.asarray(padding_mask).astype(jnp.float32)
                 .reshape(n_tiles, ts, B).transpose(0, 2, 1)
                 .reshape(n_tiles, B, 1, ts))
        inputs.append(mask4)
        in_specs.append(
            pl.BlockSpec((1, tb, 1, ts), lambda bi, si: (si, bi, 0, 0)))
    inputs += [w_in, w_out]
    in_specs += [
        pl.BlockSpec((dsrc, din), lambda bi, si: (0, 0)),
        pl.BlockSpec((dout, dsrc + din), lambda bi, si: (0, 0)),
    ]

    out_specs = (
        pl.BlockSpec((tb, dout), lambda bi, si: (bi, 0)),
        # lane-dense attention slab (source positions on lanes), resident
        # across the reduction axis so it can be normalised at the last step
        pl.BlockSpec((n_tiles, tb, 1, ts), lambda bi, si: (0, bi, 0, 0)),
    )
    out_shape = (
        jax.ShapeDtypeStruct((B, dout), jnp.float32),
        jax.ShapeDtypeStruct((n_tiles, B, 1, ts), jnp.float32),
    )
    scratch_shapes = [
        pltpu.VMEM((tb, 1, dsrc), jnp.float32),   # x = input @ W_in^T
        pltpu.VMEM((tb, 1, 1), jnp.float32),      # running max m
        pltpu.VMEM((tb, 1, 1), jnp.float32),      # running sum l
        pltpu.VMEM((tb, 1, dsrc), jnp.float32),   # context accumulator
    ]

    out, attn4 = pl.pallas_call(
        _make_attention_kernel(has_mask, dsrc, din),
        out_shape=out_shape,
        grid_spec=pltpu.PrefetchScalarGridSpec(
            num_scalar_prefetch=0,
            grid=(nb, n_tiles),
            in_specs=in_specs,
            out_specs=out_specs,
            scratch_shapes=scratch_shapes),
        compiler_params=pltpu.CompilerParams(
            dimension_semantics=("parallel", "arbitrary"),
            vmem_limit_bytes=vmem_limit_bytes),
    )(*inputs)

    # (n_tiles, B, 1, TS) -> (S, B) to match the PyTorch module's return layout
    attn = attn4.reshape(n_tiles, B, ts).transpose(0, 2, 1).reshape(S, B)
    return out, attn


def attention_layer_ref(inp, source_hids, padding_mask, w_in, w_out):
    """Pure-JAX reference mirroring the PyTorch forward."""
    x = inp @ w_in.T
    scores = jnp.sum(source_hids * x[None, :, :], axis=2)
    if padding_mask is not None:
        scores = jnp.where(padding_mask, -jnp.inf, scores)
    attn = jax.nn.softmax(scores, axis=0)
    ctx = jnp.sum(attn[:, :, None] * source_hids, axis=0)
    out = jnp.tanh(jnp.concatenate([ctx, inp], axis=1) @ w_out.T)
    return out, attn


if __name__ == "__main__":
    # small shapes: srclen=16, batch=8, input/source/output embed dims = 32
    S, B = 16, 8
    Din, Dsrc, Dout = 32, 32, 32

    key = jax.random.PRNGKey(0)
    k1, k2, k3, k4 = jax.random.split(key, 4)

    # deterministic "weights" matching nn.Linear(...).weight.uniform_(-0.1, 0.1)
    w_in = jax.random.uniform(k1, (Dsrc, Din), jnp.float32, -0.1, 0.1)
    w_out = jax.random.uniform(k2, (Dout, Dsrc + Din), jnp.float32, -0.1, 0.1)

    inp = jax.random.normal(k3, (B, Din), jnp.float32)
    source_hids = jax.random.normal(k4, (S, B, Dsrc), jnp.float32)
    lengths = jnp.array([16, 13, 11, 9, 16, 5, 16, 2], jnp.int32)
    padding_mask = jnp.arange(S)[:, None] >= lengths[None, :]     # (S, B) bool

    # 1) masked path, forced ts=8 -> grid over 2 source tiles (online softmax)
    out, attn = attention_layer_pallas(inp, source_hids, padding_mask,
                                       w_in, w_out, ts=8)
    out = jax.block_until_ready(out)
    attn = jax.block_until_ready(attn)
    out_r, attn_r = attention_layer_ref(inp, source_hids, padding_mask, w_in, w_out)
    assert jnp.allclose(out, out_r, atol=1e-4, rtol=1e-4)
    assert jnp.allclose(attn, attn_r, atol=1e-4, rtol=1e-4)

    # 2) mask-free specialised kernel (single source tile)
    out2, attn2 = attention_layer_pallas(inp, source_hids, None, w_in, w_out)
    out2 = jax.block_until_ready(out2)
    attn2 = jax.block_until_ready(attn2)
    out_r2, attn_r2 = attention_layer_ref(inp, source_hids, None, w_in, w_out)
    assert jnp.allclose(out2, out_r2, atol=1e-4, rtol=1e-4)
    assert jnp.allclose(attn2, attn_r2, atol=1e-4, rtol=1e-4)

    print("KERNEL_OK")
</pallas_src>

<mosaic_0001>
module attributes {stable_mosaic.version = 11 : i64} {
  func.func @kernel(%arg0: i32, %arg1: i32, %arg2: memref<8x32xf32, #tpu.memory_space<vmem>>, %arg3: memref<8x8x32xf32, #tpu.memory_space<vmem>>, %arg4: memref<1x8x1x8xf32, #tpu.memory_space<vmem>>, %arg5: memref<32x32xf32, #tpu.memory_space<vmem>>, %arg6: memref<32x64xf32, #tpu.memory_space<vmem>>, %arg7: memref<8x32xf32, #tpu.memory_space<vmem>>, %arg8: memref<2x8x1x8xf32, #tpu.memory_space<vmem>>, %arg9: memref<8x1x32xf32, #tpu.memory_space<vmem>>, %arg10: memref<8x1x1xf32, #tpu.memory_space<vmem>>, %arg11: memref<8x1x1xf32, #tpu.memory_space<vmem>>, %arg12: memref<8x1x32xf32, #tpu.memory_space<vmem>>) attributes {dimension_semantics = [#tpu.dimension_semantics<parallel>, #tpu.dimension_semantics<arbitrary>], iteration_bounds = array<i64: 1, 2>, scalar_prefetch = 0 : i64, scratch_operands = 4 : i64, tpu.core_type = #tpu.core_type<tc>, window_params = [{transform_indices = @transform_0, window_bounds = array<i64: 8, 32>}, {transform_indices = @transform_1, window_bounds = array<i64: 8, 8, 32>}, {transform_indices = @transform_2, window_bounds = array<i64: 1, 8, 1, 8>}, {pipeline_mode = #tpu.pipeline_mode<synchronous>, transform_indices = @transform_3, window_bounds = array<i64: 32, 32>}, {pipeline_mode = #tpu.pipeline_mode<synchronous>, transform_indices = @transform_4, window_bounds = array<i64: 32, 64>}, {transform_indices = @transform_5, window_bounds = array<i64: 8, 32>}, {transform_indices = @transform_6, window_bounds = array<i64: 2, 8, 1, 8>}]} {
    %c0_i32 = arith.constant 0 : i32
    %0 = arith.cmpi eq, %arg1, %c0_i32 : i32
    %1 = arith.extui %0 : i1 to i32
    %c0_i32_0 = arith.constant 0 : i32
    %2 = arith.cmpi ne, %1, %c0_i32_0 : i32
    scf.if %2 {
      %c0_37 = arith.constant 0 : index
      %c0_38 = arith.constant 0 : index
      %41 = vector.load %arg2[%c0_37, %c0_38] : memref<8x32xf32, #tpu.memory_space<vmem>>, vector<8x32xf32>
      %c0_39 = arith.constant 0 : index
      %c0_40 = arith.constant 0 : index
      %42 = vector.load %arg5[%c0_39, %c0_40] : memref<32x32xf32, #tpu.memory_space<vmem>>, vector<32x32xf32>
      %cst_41 = arith.constant dense<0.000000e+00> : vector<8x32xf32>
      %43 = tpu.matmul %41, %42, %cst_41 {dimension_numbers = #tpu.dot_dimension_numbers<[1], [1], [0], [0], [0, 0, 1, 0], [], []>} : vector<8x32xf32>, vector<32x32xf32>, vector<8x32xf32> -> vector<8x32xf32>
      %44 = vector.shape_cast %43 : vector<8x32xf32> to vector<8x1x32xf32>
      %c0_42 = arith.constant 0 : index
      %c0_43 = arith.constant 0 : index
      %c0_44 = arith.constant 0 : index
      %45 = vector.load %arg9[%c0_42, %c0_43, %c0_44] : memref<8x1x32xf32, #tpu.memory_space<vmem>>, vector<8x1x32xf32>
      tpu.vector_store %arg9[%c0_42, %c0_43, %c0_44], %44 {strides = array<i32>} : memref<8x1x32xf32, #tpu.memory_space<vmem>>, vector<8x1x32xf32>,
      %cst_45 = arith.constant -1.000000e+30 : f32
      %46 = vector.broadcast %cst_45 : f32 to vector<8x1x1xf32>
      %c0_46 = arith.constant 0 : index
      %c0_47 = arith.constant 0 : index
      %c0_48 = arith.constant 0 : index
      %47 = vector.load %arg10[%c0_46, %c0_47, %c0_48] : memref<8x1x1xf32, #tpu.memory_space<vmem>>, vector<8x1x1xf32>
      tpu.vector_store %arg10[%c0_46, %c0_47, %c0_48], %46 {strides = array<i32>} : memref<8x1x1xf32, #tpu.memory_space<vmem>>, vector<8x1x1xf32>,
      %cst_49 = arith.constant 0.000000e+00 : f32
      %48 = vector.broadcast %cst_49 : f32 to vector<8x1x1xf32>
      %c0_50 = arith.constant 0 : index
      %c0_51 = arith.constant 0 : index
      %c0_52 = arith.constant 0 : index
      %49 = vector.load %arg11[%c0_50, %c0_51, %c0_52] : memref<8x1x1xf32, #tpu.memory_space<vmem>>, vector<8x1x1xf32>
      tpu.vector_store %arg11[%c0_50, %c0_51, %c0_52], %48 {strides = array<i32>} : memref<8x1x1xf32, #tpu.memory_space<vmem>>, vector<8x1x1xf32>,
      %cst_53 = arith.constant 0.000000e+00 : f32
      %50 = vector.broadcast %cst_53 : f32 to vector<8x1x32xf32>
      %c0_54 = arith.constant 0 : index
      %c0_55 = arith.constant 0 : index
      %c0_56 = arith.constant 0 : index
      %51 = vector.load %arg12[%c0_54, %c0_55, %c0_56] : memref<8x1x32xf32, #tpu.memory_space<vmem>>, vector<8x1x32xf32>
      tpu.vector_store %arg12[%c0_54, %c0_55, %c0_56], %50 {strides = array<i32>} : memref<8x1x32xf32, #tpu.memory_space<vmem>>, vector<8x1x32xf32>,
    } else {
    }
    %c0 = arith.constant 0 : index
    %c0_1 = arith.constant 0 : index
    %c0_2 = arith.constant 0 : index
    %3 = vector.load %arg3[%c0, %c0_1, %c0_2] : memref<8x8x32xf32, #tpu.memory_space<vmem>>, vector<8x8x32xf32>
    %c0_3 = arith.constant 0 : index
    %c0_4 = arith.constant 0 : index
    %c0_5 = arith.constant 0 : index
    %4 = vector.load %arg9[%c0_3, %c0_4, %c0_5] : memref<8x1x32xf32, #tpu.memory_space<vmem>>, vector<8x1x32xf32>
    "tpu.trace_start"() <{level = 10 : i32, message = "bqd,bsd->bqs"}> : () -> ()
    %cst = arith.constant dense<0.000000e+00> : vector<8x1x8xf32>
    %5 = tpu.matmul %4, %3, %cst {dimension_numbers = #tpu.dot_dimension_numbers<[2], [2], [1], [1], [0, 0, 0, 1, 1, 1], [0], [0]>} : vector<8x1x32xf32>, vector<8x8x32xf32>, vector<8x1x8xf32> -> vector<8x1x8xf32>
    "tpu.trace_stop"() : () -> ()
    %c0_6 = arith.constant 0 : index
    %c0_7 = arith.constant 0 : index
    %c0_8 = arith.constant 0 : index
    %c0_9 = arith.constant 0 : index
    %6 = vector.load %arg4[%c0_6, %c0_7, %c0_8, %c0_9] : memref<1x8x1x8xf32, #tpu.memory_space<vmem>>, vector<1x8x1x8xf32>
    %7 = vector.shape_cast %6 : vector<1x8x1x8xf32> to vector<8x1x8xf32>
    %cst_10 = arith.constant 5.000000e-01 : f32
    %8 = vector.broadcast %cst_10 : f32 to vector<8x1x8xf32>
    %9 = arith.cmpf ogt, %7, %8 : vector<8x1x8xf32>
    %cst_11 = arith.constant -1.000000e+30 : f32
    %10 = vector.broadcast %cst_11 : f32 to vector<8x1x8xf32>
    %11 = arith.select %9, %10, %5 : vector<8x1x8xi1>, vector<8x1x8xf32>
    %12 = arith.index_cast %arg1 : i32 to index
    %c0_12 = arith.constant 0 : index
    %c0_13 = arith.constant 0 : index
    %c0_14 = arith.constant 0 : index
    %13 = vector.load %arg8[%12, %c0_12, %c0_13, %c0_14] : memref<2x8x1x8xf32, #tpu.memory_space<vmem>>, vector<1x8x1x8xf32>
    %14 = vector.shape_cast %13 : vector<1x8x1x8xf32> to vector<8x1x8xf32>
    %15 = vector.shape_cast %11 : vector<8x1x8xf32> to vector<1x8x1x8xf32>
    tpu.vector_store %arg8[%12, %c0_12, %c0_13, %c0_14], %15 {strides = array<i32>} : memref<2x8x1x8xf32, #tpu.memory_space<vmem>>, vector<1x8x1x8xf32>,
    %c0_15 = arith.constant 0 : index
    %c0_16 = arith.constant 0 : index
    %c0_17 = arith.constant 0 : index
    %16 = vector.load %arg10[%c0_15, %c0_16, %c0_17] : memref<8x1x1xf32, #tpu.memory_space<vmem>>, vector<8x1x1xf32>
    %cst_18 = arith.constant dense<0xFF800000> : vector<8x1xf32>
    %17 = vector.multi_reduction <maximumf>, %11, %cst_18 [2] : vector<8x1x8xf32> to vector<8x1xf32>
    %18 = vector.shape_cast %17 : vector<8x1xf32> to vector<8x1x1xf32>
    %19 = arith.maximumf %16, %18 : vector<8x1x1xf32>
    %20 = arith.subf %16, %19 : vector<8x1x1xf32>
    %21 = math.exp %20 : vector<8x1x1xf32>
    %22 = vector.broadcast %19 : vector<8x1x1xf32> to vector<8x1x8xf32>
    %23 = arith.subf %11, %22 : vector<8x1x8xf32>
    %24 = math.exp %23 : vector<8x1x8xf32>
    %c0_19 = arith.constant 0 : index
    %c0_20 = arith.constant 0 : index
    %c0_21 = arith.constant 0 : index
    %25 = vector.load %arg11[%c0_19, %c0_20, %c0_21] : memref<8x1x1xf32, #tpu.memory_space<vmem>>, vector<8x1x1xf32>
    %26 = arith.mulf %21, %25 : vector<8x1x1xf32>
    %cst_22 = arith.constant dense<0.000000e+00> : vector<8x1xf32>
    %27 = vector.multi_reduction <add>, %24, %cst_22 [2] : vector<8x1x8xf32> to vector<8x1xf32>
    %28 = vector.shape_cast %27 : vector<8x1xf32> to vector<8x1x1xf32>
    %29 = arith.addf %26, %28 : vector<8x1x1xf32>
    %c0_23 = arith.constant 0 : index
    %c0_24 = arith.constant 0 : index
    %c0_25 = arith.constant 0 : index
    %30 = vector.load %arg11[%c0_23, %c0_24, %c0_25] : memref<8x1x1xf32, #tpu.memory_space<vmem>>, vector<8x1x1xf32>
    tpu.vector_store %arg11[%c0_23, %c0_24, %c0_25], %29 {strides = array<i32>} : memref<8x1x1xf32, #tpu.memory_space<vmem>>, vector<8x1x1xf32>,
    %c0_26 = arith.constant 0 : index
    %c0_27 = arith.constant 0 : index
    %c0_28 = arith.constant 0 : index
    %31 = vector.load %arg12[%c0_26, %c0_27, %c0_28] : memref<8x1x32xf32, #tpu.memory_space<vmem>>, vector<8x1x32xf32>
    %32 = vector.broadcast %21 : vector<8x1x1xf32> to vector<8x1x32xf32>
    %33 = arith.mulf %32, %31 : vector<8x1x32xf32>
    "tpu.trace_start"() <{level = 10 : i32, message = "bqs,bsd->bqd"}> : () -> ()
    %cst_29 = arith.constant dense<0.000000e+00> : vector<8x1x32xf32>
    %34 = tpu.matmul %24, %3, %cst_29 {dimension_numbers = #tpu.dot_dimension_numbers<[2], [1], [1], [2], [0, 0, 0, 1, 1, 2], [0], [0]>} : vector<8x1x8xf32>, vector<8x8x32xf32>, vector<8x1x32xf32> -> vector<8x1x32xf32>
    "tpu.trace_stop"() : () -> ()
    %35 = arith.addf %33, %34 : vector<8x1x32xf32>
    %c0_30 = arith.constant 0 : index
    %c0_31 = arith.constant 0 : index
    %c0_32 = arith.constant 0 : index
    %36 = vector.load %arg12[%c0_30, %c0_31, %c0_32] : memref<8x1x32xf32, #tpu.memory_space<vmem>>, vector<8x1x32xf32>
    tpu.vector_store %arg12[%c0_30, %c0_31, %c0_32], %35 {strides = array<i32>} : memref<8x1x32xf32, #tpu.memory_space<vmem>>, vector<8x1x32xf32>,
    %c0_33 = arith.constant 0 : index
    %c0_34 = arith.constant 0 : index
    %c0_35 = arith.constant 0 : index
    %37 = vector.load %arg10[%c0_33, %c0_34, %c0_35] : memref<8x1x1xf32, #tpu.memory_space<vmem>>, vector<8x1x1xf32>
    tpu.vector_store %arg10[%c0_33, %c0_34, %c0_35], %19 {strides = array<i32>} : memref<8x1x1xf32, #tpu.memory_space<vmem>>, vector<8x1x1xf32>,
    %c1_i32 = arith.constant 1 : i32
    %38 = arith.cmpi eq, %arg1, %c1_i32 : i32
    %39 = arith.extui %38 : i1 to i32
    %c0_i32_36 = arith.constant 0 : i32
    %40 = arith.cmpi ne, %39, %c0_i32_36 : i32
    scf.if %40 {
      %c0_37 = arith.constant 0 : index
      %c0_38 = arith.constant 0 : index
      %c0_39 = arith.constant 0 : index
      %41 = vector.load %arg11[%c0_37, %c0_38, %c0_39] : memref<8x1x1xf32, #tpu.memory_space<vmem>>, vector<8x1x1xf32>
      %42 = tpu.reciprocal %41 : vector<8x1x1xf32> -> vector<8x1x1xf32>
      %c0_40 = arith.constant 0 : index
      %c0_41 = arith.constant 0 : index
      %c0_42 = arith.constant 0 : index
      %43 = vector.load %arg12[%c0_40, %c0_41, %c0_42] : memref<8x1x32xf32, #tpu.memory_space<vmem>>, vector<8x1x32xf32>
      %44 = vector.broadcast %42 : vector<8x1x1xf32> to vector<8x1x32xf32>
      %45 = arith.mulf %43, %44 : vector<8x1x32xf32>
      %46 = vector.shape_cast %45 : vector<8x1x32xf32> to vector<8x32xf32>
      %c0_43 = arith.constant 0 : index
      %c0_44 = arith.constant 0 : index
      %47 = vector.load %arg6[%c0_43, %c0_44] : memref<32x64xf32, #tpu.memory_space<vmem>>, vector<32x32xf32>
      %c0_45 = arith.constant 0 : index
      %c32 = arith.constant 32 : index
      %48 = vector.load %arg6[%c0_45, %c32] : memref<32x64xf32, #tpu.memory_space<vmem>>, vector<32x32xf32>
      %cst_46 = arith.constant dense<0.000000e+00> : vector<8x32xf32>
      %49 = tpu.matmul %46, %47, %cst_46 {dimension_numbers = #tpu.dot_dimension_numbers<[1], [1], [0], [0], [0, 0, 1, 0], [], []>} : vector<8x32xf32>, vector<32x32xf32>, vector<8x32xf32> -> vector<8x32xf32>
      %c0_47 = arith.constant 0 : index
      %c0_48 = arith.constant 0 : index
      %50 = vector.load %arg2[%c0_47, %c0_48] : memref<8x32xf32, #tpu.memory_space<vmem>>, vector<8x32xf32>
      %cst_49 = arith.constant dense<0.000000e+00> : vector<8x32xf32>
      %51 = tpu.matmul %50, %48, %cst_49 {dimension_numbers = #tpu.dot_dimension_numbers<[1], [1], [0], [0], [0, 0, 1, 0], [], []>} : vector<8x32xf32>, vector<32x32xf32>, vector<8x32xf32> -> vector<8x32xf32>
      %52 = arith.addf %49, %51 : vector<8x32xf32>
      %53 = math.tanh %52 : vector<8x32xf32>
      %c0_50 = arith.constant 0 : index
      %c0_51 = arith.constant 0 : index
      %54 = vector.load %arg7[%c0_50, %c0_51] : memref<8x32xf32, #tpu.memory_space<vmem>>, vector<8x32xf32>
      tpu.vector_store %arg7[%c0_50, %c0_51], %53 {strides = array<i32>} : memref<8x32xf32, #tpu.memory_space<vmem>>, vector<8x32xf32>,
      %c0_52 = arith.constant 0 : index
      %c0_53 = arith.constant 0 : index
      %c0_54 = arith.constant 0 : index
      %c0_55 = arith.constant 0 : index
      %55 = vector.load %arg8[%c0_52, %c0_53, %c0_54, %c0_55] : memref<2x8x1x8xf32, #tpu.memory_space<vmem>>, vector<2x8x1x8xf32>
      %c0_56 = arith.constant 0 : index
      %c0_57 = arith.constant 0 : index
      %c0_58 = arith.constant 0 : index
      %56 = vector.load %arg10[%c0_56, %c0_57, %c0_58] : memref<8x1x1xf32, #tpu.memory_space<vmem>>, vector<8x1x1xf32>
      %57 = vector.shape_cast %56 : vector<8x1x1xf32> to vector<1x8x1x1xf32>
      %58 = vector.broadcast %57 : vector<1x8x1x1xf32> to vector<2x8x1x8xf32>
      %59 = arith.subf %55, %58 : vector<2x8x1x8xf32>
      %60 = math.exp %59 : vector<2x8x1x8xf32>
      %61 = vector.shape_cast %42 : vector<8x1x1xf32> to vector<1x8x1x1xf32>
      %62 = vector.broadcast %61 : vector<1x8x1x1xf32> to vector<2x8x1x8xf32>
      %63 = arith.mulf %60, %62 : vector<2x8x1x8xf32>
      %c0_59 = arith.constant 0 : index
      %c0_60 = arith.constant 0 : index
      %c0_61 = arith.constant 0 : index
      %c0_62 = arith.constant 0 : index
      %64 = vector.load %arg8[%c0_59, %c0_60, %c0_61, %c0_62] : memref<2x8x1x8xf32, #tpu.memory_space<vmem>>, vector<2x8x1x8xf32>
      tpu.vector_store %arg8[%c0_59, %c0_60, %c0_61, %c0_62], %63 {strides = array<i32>} : memref<2x8x1x8xf32, #tpu.memory_space<vmem>>, vector<2x8x1x8xf32>,
    } else {
    }
    return
  }
  func.func @transform_0(%arg0: i32, %arg1: i32) -> (i32, i32) {
    %c0_i32 = arith.constant 0 : i32
    %c0_i32_0 = arith.constant 0 : i32
    return %arg0, %c0_i32 : i32, i32
  }
  func.func @transform_1(%arg0: i32, %arg1: i32) -> (i32, i32, i32) {
    %c0_i32 = arith.constant 0 : i32
    %c0_i32_0 = arith.constant 0 : i32
    return %arg0, %arg1, %c0_i32 : i32, i32, i32
  }
  func.func @transform_2(%arg0: i32, %arg1: i32) -> (i32, i32, i32, i32) {
    %c0_i32 = arith.constant 0 : i32
    %c0_i32_0 = arith.constant 0 : i32
    %c0_i32_1 = arith.constant 0 : i32
    return %arg1, %arg0, %c0_i32, %c0_i32_0 : i32, i32, i32, i32
  }
  func.func @transform_3(%arg0: i32, %arg1: i32) -> (i32, i32) {
    %c0_i32 = arith.constant 0 : i32
    %c0_i32_0 = arith.constant 0 : i32
    %c0_i32_1 = arith.constant 0 : i32
    return %c0_i32, %c0_i32_0 : i32, i32
  }
  func.func @transform_4(%arg0: i32, %arg1: i32) -> (i32, i32) {
    %c0_i32 = arith.constant 0 : i32
    %c0_i32_0 = arith.constant 0 : i32
    %c0_i32_1 = arith.constant 0 : i32
    return %c0_i32, %c0_i32_0 : i32, i32
  }
  func.func @transform_5(%arg0: i32, %arg1: i32) -> (i32, i32) {
    %c0_i32 = arith.constant 0 : i32
    %c0_i32_0 = arith.constant 0 : i32
    return %arg0, %c0_i32 : i32, i32
  }
  func.func @transform_6(%arg0: i32, %arg1: i32) -> (i32, i32, i32, i32) {
    %c0_i32 = arith.constant 0 : i32
    %c0_i32_0 = arith.constant 0 : i32
    %c0_i32_1 = arith.constant 0 : i32
    %c0_i32_2 = arith.constant 0 : i32
    return %c0_i32, %arg0, %c0_i32_0, %c0_i32_1 : i32, i32, i32, i32
  }
}

</mosaic_0001>

<bundles_post_ra>
// kernel: tpu_custom_call.1
= control target key start
LH: loop header
LB: loop body
LE: loop exit
PB: predicated region body
PF: predicated region fallthrough
CT: control target
= control target key end

     0   :  { %s3021_s0 = inlined_call_operand.hbm [shape: f32[8,32], index: 0, kind: input, shape index: {}]   ;;  %s3022_s1 = inlined_call_operand.hbm [shape: f32[8,16,32], index: 1, kind: input, shape index: {}]   ;;  %s3023_s2 = inlined_call_operand.hbm [shape: f32[2,8,1,8], index: 2, kind: input, shape index: {}]   ;;  %s3024_s3 = inlined_call_operand.hbm [shape: f32[32,32], index: 3, kind: input, shape index: {}]   ;;  %s3025_s4 = inlined_call_operand.hbm [shape: f32[32,64], index: 4, kind: input, shape index: {}]   ;;  %s3026_s5 = inlined_call_operand.hbm [shape: f32[8,32], index: 5, kind: output, shape index: {0}]   ;;  %s3027_s6 = inlined_call_operand.hbm [shape: f32[2,8,1,8], index: 6, kind: output, shape index: {1}]  }
   0x1   :  { %3037 = sst [smem:[#allocation27_spill]] %s3022_s1 }
   0x2   :  { %3038 = sst [smem:[#allocation28_spill]] %s3024_s3 }
   0x3   :  { %12 = vsyncpa [#allocation7], 0 }
   0x4   :  { %13 = vsyncpa [#allocation10], 0 }
   0x5   :  { %15 = vsyncpa [#allocation10 + $0x1], 0 }
   0x6   :  { %16 = vsyncpa [#allocation13], 0 }
   0x7   :  { %17 = vsyncpa [#allocation8], 0 }
   0x8   :  { %18 = vsyncpa [#allocation17], 0  ;;  %s2406_s21 = smov 0   ;;  %s2408_s22 = smov 0  }
   0x9   :  { %s2410_s23 = smov 0   ;;  %s2412_s24 = smov 0  }
   0xa   :  { %s2414_s25 = smov 0   ;;  %s2416_s26 = smov 0  }
   0xb LB: > { %3039 = sst [smem:[#allocation23_spill]] %s2340_s23  ;;  %s2435_s27 = sadd.s32 4294967295, %s2352_s26   ;;  %s2352_s26 = sphi %s2416_s26, %s24_s26   ;;  %s2348_s25 = sphi %s2414_s25, %s3098_s25   ;;  %s2344_s24 = sphi %s2412_s24, %s3097_s24   ;;  %s2340_s23 = sphi %s2410_s23, %s3096_s23   ;;  %s2336_s22 = sphi %s2408_s22, %s3095_s22   ;;  %s2332_s21 = sphi %s2406_s21, %s3094_s21  }
   0xc   : > { %3040 = sst [smem:[#allocation24_spill]] %s2352_s26  ;;  %p84_p0 = scmp.ne.s32.totalorder %s2336_s22, %s2332_s21 }
   0xd   : > { %p85_p1 = scmp.eq.s32.totalorder %s2435_s27, 0  ;;  %p1812_p2 = scmp.ge.s32.totalorder %s2352_s26, 1 }
   0xe   : > { %p217_p3 = scmp.lt.s32.totalorder %s2352_s26, 3  ;;  %s3042_s3 = sld [smem:[#allocation28_spill]] }
   0xf   : > { %p2443_p4 = por %p85_p1, %p84_p0  ;;  %s2354_s9 = smov [#allocation12]  }
  0x10   : > { %p2450_p5 = pnand %p1812_p2, %p217_p3  ;;  %s244_s10 = sshll.u32 %s2354_s9, 4  ;;  %s245_s10 = int_to_ptr.vmem [resolvable:$true] %s244_s10 }
  0x11   : > { %s3028_s12 = smov 128   ;;  %s3030_s13 = smov 8  }
  0x12   : > { %p1899_p6 = pneg %p2450_p5  ;;  %s33_s14 = sadd.s32 1, %s2348_s25 }
  0x13   : > { %p34_p8 = scmp.ge.s32.totalorder %s33_s14, 2  ;;  %s71_s15 = sadd.s32 1, %s2340_s23 }
  0x14   : > { %s242_s7 = sshll.u32 %s3042_s3, 4  ;;  %p2458_p7 = pnand %p1899_p6, %p85_p1  ;;  %s243_s7 = int_to_ptr.hbm [resolvable:$true] %s242_s7 }
  0x15   : > { %p78_p9 = scmp.ne.s32.totalorder %s2340_s23, %s2336_s22  ;;  %p79_p10 = scmp.eq.s32.totalorder %s2352_s26, 0 }
  0x16   : > { %1905 = dma.hbm_to_vmem [thread:$0]  (!%p2458_p7), %s243_s7, 512, %s245_s10, [#allocation13], %s3028_s12, %s3028_s12, %s3030_s13  }
  0x17   : > { %s3100_s14 = smov (%p34_p8, %s33_s14), 0  ;;  %p2474_p11 = por %p79_p10, %p78_p9 }
  0x18   : > { %3045 = sst [smem:[#allocation25_spill]] %s3100_s14  ;;  %p1919_p12 = scmp.lt.s32.totalorder %s2352_s26, 2 }
  0x19   : > { %s67_s17 = ssub.s32 %s2348_s25, %s3100_s14  ;;  %s272_s18 = sand.u32 1, %s2352_s26  }
  0x1a   : > { %p69_p13 = scmp.eq.s32.totalorder %s67_s17, 0  ;;  %s274_s19 = sand.u32 1, %s2340_s23  }
  0x1b   : > { %s3032_s20 = sshll.u32 %s2348_s25, 3  ;;  %s1817_s29 = sshll.u32 %s274_s19, 6 }
  0x1c   : > { %s2485_s21 = scalar_select %p69_p13, %s2340_s23, %s71_s15  }
  0x1d   : > { %s3048_s1 = sld [smem:[#allocation27_spill]]  ;;  %s276_s12 = scalar_lea.vmem [#allocation9], %s1817_s29 }
  0x1e   : > { %3047 = sst [smem:[#allocation26_spill]] %s2485_s21  ;;  %s286_s13 = sshll.u32 %s276_s12, 4  ;;  %s287_s13 = int_to_ptr.vmem [resolvable:$true] %s286_s13 }
  0x1f   : > { %p2496_p0 = pnand %p1919_p12, %p2474_p11  ;;  %s273_s15 = scalar_lea.sflag [#allocation10], %s272_s18 }
  0x20   : > { %s2357_s3 = smov 256   ;;  %s3050_s30 = smov 8  }
  0x21   : > { %s3051_s7 = smov 128   ;;  %s231_s12 = sshll.u32 %s3021_s0, 4  ;;  %s232_s12 = int_to_ptr.hbm [resolvable:$true] %s231_s12 }
  0x22   : > { %s2358_s16 = smov [#allocation6]   ;;  %s256_s21 = sshll.u32 %s3025_s4, 4  ;;  %s257_s21 = int_to_ptr.hbm [resolvable:$true] %s256_s21 }
  0x23   : > { %s283_s9 = scalar_lea.hbm %s3048_s1, %s3032_s20  ;;  %s233_s29 = sshll.u32 %s2358_s16, 4  ;;  %s234_s29 = int_to_ptr.vmem [resolvable:$true] %s233_s29 }
  0x24   : > { %s284_s10 = sshll.u32 %s283_s9, 4  ;;  %s2359_s18 = smov [#allocation14]   ;;  %s285_s10 = int_to_ptr.hbm [resolvable:$true] %s284_s10 }
  0x25   : > { %1912 = dma.hbm_to_vmem [thread:$0]  (!%p2496_p0), %s285_s10, 1024, %s287_s13, %s273_s15, %s2357_s3, %s3051_s7, %s3050_s30  }
  0x26   : > { %1902 = dma.hbm_to_vmem [thread:$0]  (!%p2458_p7), %s232_s12, 128, %s234_s29, [#allocation7]  }
  0x27   : > { %s258_s23 = sshll.u32 %s2359_s18, 4  ;;  %s1819_s26 = sshll.u32 %s274_s19, 3  ;;  %s259_s23 = int_to_ptr.vmem [resolvable:$true] %s258_s23 }
  0x28   : > { %1908 = dma.hbm_to_vmem [thread:$0]  (!%p2458_p7), %s257_s21, 512, %s259_s23, [#allocation13], %s3051_s7, %s3051_s7, %s3050_s30  }
  0x29   : > { %s3052_s3 = sshll.u32 %s2348_s25, 3  ;;  %s300_s1 = scalar_lea.vmem [#allocation11], %s1819_s26 }
  0x2a   : > { %s306_s10 = scalar_lea.hbm %s3023_s2, %s3052_s3  ;;  %s309_s14 = sshll.u32 %s300_s1, 4  ;;  %s310_s14 = int_to_ptr.vmem [resolvable:$true] %s309_s14 }
  0x2b   : > { %s307_s9 = sshll.u32 %s306_s10, 4  ;;  %s2360_s12 = smov 16   ;;  %s308_s9 = int_to_ptr.hbm [resolvable:$true] %s307_s9 }
  0x2c   : > { %s2361_s16 = smov 1   ;;  %321 = sbr.rel (%p2450_p5) target bundleno = 1088 (0x440), region = 40 }
  0x2d   : > { %1915 = dma.hbm_to_vmem [thread:$0]  (!%p2496_p0), %s308_s9, 128, %s310_s14, %s273_s15, %s2360_s12, %s2360_s12, %s2361_s16  }
  0x31   : > { %2311 = dma.done.wait (%p85_p1), [#allocation7], 128  }
  0x32   : > { %2313 = vsyncadd (%p85_p1), [#allocation7], 4294967168  ;;  %s328_s23 = sand.u32 1, %s2435_s27   ;;  %s330_s26 = sand.u32 1, %s2336_s22  }
  0x33   : > { %s1823_s11 = sshll.u32 %s330_s26, 6  ;;  %s329_s19 = scalar_lea.sflag [#allocation10], %s328_s23 }
  0x34   : > { %s2532_s21 = scalar_lea.vmem [#allocation9], %s1823_s11 }
  0x35   : > { %2315 = dma.done.wait (%p2443_p4), %s329_s19, 1152  }
  0x36   : > { %2317 = vsyncadd (%p2443_p4), %s329_s19, 4294966144  ;;  %s1824_s8 = sshll.u32 %s330_s26, 3 }
  0x37   : > { %s2538_s17 = scalar_lea.vmem [#allocation11], %s1824_s8 }
  0x38   : > { %2319 = dma.done.wait (%p85_p1), [#allocation13], 1024  }
  0x39   : > { %2321 = vsyncadd (%p85_p1), [#allocation13], 4294966272  ;;  %p1827_p2 = scmp.ne.s32.totalorder %s2344_s24, 0 }
  0x3b   : > { %388 = sbr.rel (%p1827_p2) target bundleno = 215 (0xd7), region = 64 }
  0x40   : > { %v393_v0 = vld [vmem:[#allocation12 + $0x18] sm:$0xff]  ;;  %vm394_vm0 = vcmask 261120   ;;  %v392_v1 = vld [vmem:[#allocation12 + $0x10] sm:$0xff]  ;;  %v391_v2 = vld [vmem:[#allocation12 + $0x8] sm:$0xff]  ;;  %vm454_vm1 = vcmask 0   ;;  %v2363_v6 = vmov 0.0  }
  0x41   : > { %1828 = vmatpush.xpose.msk.msra.mxu0 %vm394_vm0, %v393_v0  ;;  %v390_v3 = vld [vmem:[#allocation12] sm:$0xff]  ;;  %v389_v4 = vld [vmem:[#allocation6] sm:$0xff]  ;;  %v2362_v5 = vmov -1e+30   ;;  %463 = vst.msk [vmem:[#allocation4] sm:$0x1] %vm454_vm1, %v2363_v6 }
  0x42   : > { %455 = vst.msk [vmem:[#allocation3] sm:$0x1] %vm454_vm1, %v2362_v5  ;;  %vm445_vm2 = vcmask 253952  }
  0x43   : > { %456 = vst.msk [vmem:[#allocation3 + $0x1] sm:$0x1] %vm454_vm1, %v2362_v5 }
  0x44   : > { %457 = vst.msk [vmem:[#allocation3 + $0x2] sm:$0x1] %vm454_vm1, %v2362_v5 }
  0x45   : > { %1829 = vmatpush.xpose.msk.msra.mxu0 %vm394_vm0, %v392_v1  ;;  %458 = vst.msk [vmem:[#allocation3 + $0x3] sm:$0x1] %vm454_vm1, %v2362_v5 }
  0x46   : > { %459 = vst.msk [vmem:[#allocation3 + $0x4] sm:$0x1] %vm454_vm1, %v2362_v5 }
  0x47   : > { %460 = vst.msk [vmem:[#allocation3 + $0x5] sm:$0x1] %vm454_vm1, %v2362_v5 }
  0x48   : > { %461 = vst.msk [vmem:[#allocation3 + $0x6] sm:$0x1] %vm454_vm1, %v2362_v5 }
  0x49   : > { %1830 = vmatpush.xpose.msk.msra.mxu0 %vm394_vm0, %v391_v2  ;;  %462 = vst.msk [vmem:[#allocation3 + $0x7] sm:$0x1] %vm454_vm1, %v2362_v5 }
  0x4a   : > { %464 = vst.msk [vmem:[#allocation4 + $0x1] sm:$0x1] %vm454_vm1, %v2363_v6 }
  0x4b   : > { %465 = vst.msk [vmem:[#allocation4 + $0x2] sm:$0x1] %vm454_vm1, %v2363_v6 }
  0x4c   : > { %466 = vst.msk [vmem:[#allocation4 + $0x3] sm:$0x1] %vm454_vm1, %v2363_v6 }
  0x4d   : > { %1831 = vmatpush.xpose.msk.msra.mxu0 %vm394_vm0, %v390_v3  ;;  %467 = vst.msk [vmem:[#allocation4 + $0x4] sm:$0x1] %vm454_vm1, %v2363_v6 }
  0x4e   : > { %468 = vst.msk [vmem:[#allocation4 + $0x5] sm:$0x1] %vm454_vm1, %v2363_v6 }
  0x4f   : > { %469 = vst.msk [vmem:[#allocation4 + $0x6] sm:$0x1] %vm454_vm1, %v2363_v6 }
  0x50   : > { %1832 = vmatmul.msk.f32.vlgmr.msra.gmra.mxu0 %vm394_vm0, %v389_v4  ;;  %470 = vst.msk [vmem:[#allocation4 + $0x7] sm:$0x1] %vm454_vm1, %v2363_v6 }
  0x51   : > { %471 = vst.msk [vmem:[#allocation5] sm:$0x1] %vm445_vm2, %v2363_v6 }
  0x52   : > { %472 = vst.msk [vmem:[#allocation5 + $0x1] sm:$0x1] %vm445_vm2, %v2363_v6 }
  0x53   : > { %473 = vst.msk [vmem:[#allocation5 + $0x2] sm:$0x1] %vm445_vm2, %v2363_v6 }
  0x54   : > { %474 = vst.msk [vmem:[#allocation5 + $0x3] sm:$0x1] %vm445_vm2, %v2363_v6 }
  0x55   : > { %475 = vst.msk [vmem:[#allocation5 + $0x4] sm:$0x1] %vm445_vm2, %v2363_v6 }
  0x56   : > { %476 = vst.msk [vmem:[#allocation5 + $0x5] sm:$0x1] %vm445_vm2, %v2363_v6 }
  0x57   : > { %477 = vst.msk [vmem:[#allocation5 + $0x6] sm:$0x1] %vm445_vm2, %v2363_v6 }
  0x58   : > { %478 = vst.msk [vmem:[#allocation5 + $0x7] sm:$0x1] %vm445_vm2, %v2363_v6 }
  0xcd   : > { %v427_v7 = vpop.f32.mrf.mxu0 }
  0xce   : > { %v431_v8 = vrot.slane %v427_v7, 1  ;;  %v432_v9 = vrot.slane %v427_v7, 2  ;;  %v433_v10 = vrot.slane %v427_v7, 3  ;;  %446 = vst.msk [vmem:[#allocation2] sm:$0x1] %vm445_vm2, %v427_v7  ;;  %v434_v11 = vrot.slane %v427_v7, 4 }
  0xcf   : > { %v435_v12 = vrot.slane %v427_v7, 5  ;;  %v436_v13 = vrot.slane %v427_v7, 6  ;;  %v437_v14 = vrot.slane %v427_v7, 7 }
  0xd0   : > { %447 = vst.msk [vmem:[#allocation2 + $0x1] sm:$0x1] %vm445_vm2, %v431_v8 }
  0xd1   : > { %448 = vst.msk [vmem:[#allocation2 + $0x2] sm:$0x1] %vm445_vm2, %v432_v9 }
  0xd2   : > { %449 = vst.msk [vmem:[#allocation2 + $0x3] sm:$0x1] %vm445_vm2, %v433_v10 }
  0xd3   : > { %450 = vst.msk [vmem:[#allocation2 + $0x4] sm:$0x1] %vm445_vm2, %v434_v11 }
  0xd4   : > { %451 = vst.msk [vmem:[#allocation2 + $0x5] sm:$0x1] %vm445_vm2, %v435_v12 }
  0xd5   : > { %452 = vst.msk [vmem:[#allocation2 + $0x6] sm:$0x1] %vm445_vm2, %v436_v13 }
  0xd6   : > { %453 = vst.msk [vmem:[#allocation2 + $0x7] sm:$0x1] %vm445_vm2, %v437_v14 }
  0xd7 PF: > { %v479_v15 = vld [vmem:[%s2532_s21] sm:$0xff]  ;;  %vm495_vm3 = vcmask 261120   ;;  %v481_v16 = vld [vmem:[%s2532_s21 + $0x10] sm:$0xff]  ;;  %v487_v17 = vld [vmem:[#allocation2] sm:$0x1]  ;;  %s1849_s28 = sshll.u32 %s2344_s24, 3 }
  0xd8   : > { %1833 = vmatpush.xpose.msk.msra.mxu0 %vm495_vm3, %v479_v15  ;;  %1837 = vmatpush.xpose.msk.msra.mxu2 %vm495_vm3, %v481_v16  ;;  %v489_v18 = vld [vmem:[#allocation2 + $0x2] sm:$0x1]  ;;  %v485_v19 = vld [vmem:[%s2532_s21 + $0x30] sm:$0xff]  ;;  %v480_v23 = vld [vmem:[%s2532_s21 + $0x8] sm:$0xff]  ;;  %vm3036_vm5 = vcmask 57344   ;;  %s2607_s15 = scalar_lea.vmem [#allocation16], %s1849_s28 }
  0xd9   : > { %v482_v20 = vld [vmem:[%s2532_s21 + $0x18] sm:$0xff]  ;;  %v483_v24 = vld [vmem:[%s2532_s21 + $0x20] sm:$0xff]  ;;  %v484_v25 = vld [vmem:[%s2532_s21 + $0x28] sm:$0xff]  ;;  %1835 = vmatpush.xpose.msk.msra.mxu1 %vm495_vm3, %v480_v23  ;;  %v2364_v63 = vmov 0   ;;  %vm923_vm13 = vcmask 0   ;;  %vm996_vm14 = vcmask 64512  }
  0xda   : > { %1839 = vmatpush.xpose.msk.msra.mxu3 %vm495_vm3, %v482_v20  ;;  %v490_v21 = vld [vmem:[#allocation2 + $0x3] sm:$0x1]  ;;  %v488_v26 = vld [vmem:[#allocation2 + $0x1] sm:$0x1]  ;;  %v491_v28 = vld [vmem:[#allocation2 + $0x4] sm:$0x1]  ;;  %1994 = vset.pattern.permute.xlu1 %v2364_v63 }
  0xdb   : > { %v486_v22 = vld [vmem:[%s2532_s21 + $0x38] sm:$0xff]  ;;  %1834 = vmatmul.msk.f32.vlgmr.msra.gmra.mxu0 %vm495_vm3, %v487_v17  ;;  %1838 = vmatmul.msk.f32.vlgmr.msra.gmra.mxu2 %vm495_vm3, %v489_v18  ;;  %v704_v31 = vld [vmem:[%s2538_s17] sm:$0x1]  ;;  %v705_v32 = vld [vmem:[%s2538_s17 + $0x1] sm:$0x1]  ;;  %vm1189_vm15 = vcmask 253952  }
  0xdc   : > { %1845 = vmatpush.xpose.msk.msrb.mxu2 %vm495_vm3, %v485_v19  ;;  %1841 = vmatpush.xpose.msk.msrb.mxu0 %vm495_vm3, %v483_v24  ;;  %v493_v27 = vld [vmem:[#allocation2 + $0x6] sm:$0x1]  ;;  %v492_v30 = vld [vmem:[#allocation2 + $0x5] sm:$0x1]  ;;  %vm712_vm4 = vcmp.gt.f32.partialorder %v704_v31, 0.5  ;;  %vm713_vm6 = vcmp.gt.f32.partialorder %v705_v32, 0.5 }
  0xdd   : > { %1840 = vmatmul.msk.f32.vlgmr.msra.gmra.mxu3 %vm495_vm3, %v490_v21  ;;  %1843 = vmatpush.xpose.msk.msrb.mxu1 %vm495_vm3, %v484_v25  ;;  %v494_v29 = vld [vmem:[#allocation2 + $0x7] sm:$0x1]  ;;  %v706_v35 = vld [vmem:[%s2538_s17 + $0x2] sm:$0x1]  ;;  %v707_v37 = vld [vmem:[%s2538_s17 + $0x3] sm:$0x1] }
  0xde   : > { %1847 = vmatpush.xpose.msk.msrb.mxu3 %vm495_vm3, %v486_v22  ;;  %1836 = vmatmul.msk.f32.vlgmr.msra.gmra.mxu1 %vm495_vm3, %v488_v26  ;;  %v708_v38 = vld [vmem:[%s2538_s17 + $0x4] sm:$0x1]  ;;  %vm714_vm7 = vcmp.gt.f32.partialorder %v706_v35, 0.5  ;;  %vm715_vm8 = vcmp.gt.f32.partialorder %v707_v37, 0.5  ;;  %v709_v44 = vld [vmem:[%s2538_s17 + $0x5] sm:$0x1] }
  0xdf   : > { %vm716_vm9 = vcmp.gt.f32.partialorder %v708_v38, 0.5  ;;  %v710_v49 = vld [vmem:[%s2538_s17 + $0x6] sm:$0x1]  ;;  %v711_v51 = vld [vmem:[%s2538_s17 + $0x7] sm:$0x1]  ;;  %vm717_vm10 = vcmp.gt.f32.partialorder %v709_v44, 0.5  ;;  %1992 = vset.pattern.permute.xlu2 %v2364_v63  ;;  %1993 = vset.pattern.permute.xlu0 %v2364_v63 }
  0xe0   : > { %1061 = vmatpush.msra.mxu2 %v481_v16  ;;  %1015 = vmatpush.msra.mxu0 %v479_v15  ;;  %vm718_vm11 = vcmp.gt.f32.partialorder %v710_v49, 0.5  ;;  %vm719_vm12 = vcmp.gt.f32.partialorder %v711_v51, 0.5  ;;  %v739_v0 = vld [vmem:[#allocation3] sm:$0x1]  ;;  %v741_v3 = vld [vmem:[#allocation3 + $0x2] sm:$0x1] }
  0xe1   : > { %1038 = vmatpush.msra.mxu1 %v480_v23  ;;  %v740_v5 = vld [vmem:[#allocation3 + $0x1] sm:$0x1]  ;;  %v742_v10 = vld [vmem:[#allocation3 + $0x3] sm:$0x1]  ;;  %v2671_v11 = vld [vmem:[#allocation3 + $0x6] sm:$0x1] }
  0xe2   : > { %1084 = vmatpush.msra.mxu3 %v482_v20  ;;  %v2673_v14 = vld [vmem:[#allocation3 + $0x5] sm:$0x1]  ;;  %v743_v23 = vld [vmem:[#allocation3 + $0x4] sm:$0x1]  ;;  %p1858_p1 = scmp.ne.s32.totalorder %s2344_s24, 1 }
  0xe3   : > { %1846 = vmatmul.msk.f32.vlgmr.msrb.gmra.mxu2 %vm495_vm3, %v493_v27  ;;  %1842 = vmatmul.msk.f32.vlgmr.msrb.gmra.mxu0 %vm495_vm3, %v491_v28  ;;  %s2365_s30 = smov (!%p1858_p1), 96  }
  0xe4   : > { %1153 = vmatpush.msrb.mxu2 %v485_v19  ;;  %1107 = vmatpush.msrb.mxu0 %v483_v24 }
  0xe5   : > { %1848 = vmatmul.msk.f32.vlgmr.msrb.gmra.mxu3 %vm495_vm3, %v494_v29 }
  0xe6   : > { %1176 = vmatpush.msrb.mxu3 %v486_v22  ;;  %1844 = vmatmul.msk.f32.vlgmr.msrb.gmra.mxu1 %vm495_vm3, %v492_v30  ;;  %v2690_v22 = vld [vmem:[#allocation3 + $0x7] sm:$0x1] }
  0xe7   : > { %1130 = vmatpush.msrb.mxu1 %v484_v25 }
 0x158   : > { %v519_v33 = vpop.f32.mrf.mxu0 }
 0x159   : > { %v2604_v34 = vsel %vm712_vm4, -1e+30, %v519_v33 }
 0x15a   : > { %731 = vst.msk [vmem:[%s2607_s15] sm:$0x1] %vm3036_vm5, %v2604_v34  ;;  %v747_v36 = vsel %vm3036_vm5, %v2604_v34, -inf }
 0x15b   : > { %748 = vmax.xlane.f32.xlu1 %v747_v36  ;;  %v545_v39 = vpop.f32.mrf.mxu1 }
 0x15c   : > { %v2616_v40 = vsel %vm713_vm6, -1e+30, %v545_v39 }
 0x15d   : > { %732 = vst.msk [vmem:[%s2607_s15 + $0x1] sm:$0x1] %vm3036_vm5, %v2616_v40  ;;  %v750_v47 = vsel %vm3036_vm5, %v2616_v40, -inf }
 0x15e   : > { %v571_v41 = vpop.f32.mrf.mxu2 }
 0x15f   : > { %v2621_v42 = vsel %vm714_vm7, -1e+30, %v571_v41 }
 0x160   : > { %v597_v43 = vpop.f32.mrf.mxu3  ;;  %733 = vst.msk [vmem:[%s2607_s15 + $0x2] sm:$0x1] %vm3036_vm5, %v2621_v42  ;;  %v753_v45 = vsel %vm3036_vm5, %v2621_v42, -inf  ;;  %v623_v48 = vpop.f32.mrf.mxu0 }
 0x161   : > { %v2629_v46 = vsel %vm715_vm8, -1e+30, %v597_v43  ;;  %754 = vmax.xlane.f32.xlu0 %v753_v45  ;;  %v2637_v50 = vsel %vm716_vm9, -1e+30, %v623_v48 }
 0x162   : > { %734 = vst.msk [vmem:[%s2607_s15 + $0x3] sm:$0x1] %vm3036_vm5, %v2629_v46  ;;  %v756_v55 = vsel %vm3036_vm5, %v2629_v46, -inf  ;;  %v759_v62 = vsel %vm3036_vm5, %v2637_v50, -inf }
 0x163   : > { %735 = vst.msk [vmem:[%s2607_s15 + $0x4] sm:$0x1] %vm3036_vm5, %v2637_v50  ;;  %751 = vmax.xlane.f32.xlu1 %v750_v47  ;;  %v649_v52 = vpop.f32.mrf.mxu1 }
 0x164   : > { %v2643_v53 = vsel %vm717_vm10, -1e+30, %v649_v52 }
 0x165   : > { %736 = vst.msk [vmem:[%s2607_s15 + $0x5] sm:$0x1] %vm3036_vm5, %v2643_v53  ;;  %v762_v60 = vsel %vm3036_vm5, %v2643_v53, -inf }
 0x166   : > { %v675_v54 = vpop.f32.mrf.mxu2 }
 0x167   : > { %v2650_v56 = vsel %vm718_vm11, -1e+30, %v675_v54 }
 0x168   : > { %v701_v57 = vpop.f32.mrf.mxu3  ;;  %737 = vst.msk [vmem:[%s2607_s15 + $0x6] sm:$0x1] %vm3036_vm5, %v2650_v56  ;;  %v765_v58 = vsel %vm3036_vm5, %v2650_v56, -inf }
 0x169   : > { %v2657_v59 = vsel %vm719_vm12, -1e+30, %v701_v57  ;;  %757 = vmax.xlane.f32.xlu0 %v756_v55  ;;  %766 = vmax.xlane.f32.xlu2 %v765_v58 }
 0x16a   : > { %738 = vst.msk [vmem:[%s2607_s15 + $0x7] sm:$0x1] %vm3036_vm5, %v2657_v59  ;;  %v768_v61 = vsel %vm3036_vm5, %v2657_v59, -inf }
 0x16b   : > { %763 = vmax.xlane.f32.xlu1 %v762_v60 }
 0x171   : > { %769 = vmax.xlane.f32.xlu2 %v768_v61  ;;  %760 = vmax.xlane.f32.xlu0 %v759_v62 }
 0x1ce   : > { %v749_v1 = vpop.xlane.xlu1 %748 }
 0x1cf   : > { %v771_v2 = vmax.f32 %v739_v0, %v749_v1 }
 0x1d1   : > { %1198 = vst.msk [vmem:[#allocation3] sm:$0x1] %vm923_vm13, %v771_v2  ;;  %805 = vperm.xlu1 %1994, %v771_v2   ;;  %v779_v29 = vsub.f32 %v739_v0, %v771_v2 }
 0x1d3   : > { %v787_v35 = vmul.f32 1.442695, %v779_v29 }
 0x1d4   : > { %v755_v4 = vpop.xlane.xlu0 %754 }
 0x1d5   : > { %v773_v6 = vmax.f32 %v741_v3, %v755_v4 }
 0x1d6   : > { %v752_v7 = vpop.xlane.xlu1 %751 }
 0x1d7   : > { %1200 = vst.msk [vmem:[#allocation3 + $0x2] sm:$0x1] %vm923_vm13, %v773_v6  ;;  %817 = vperm.xlu2 %1992, %v773_v6   ;;  %v772_v8 = vmax.f32 %v740_v5, %v752_v7  ;;  %v781_v9 = vsub.f32 %v741_v3, %v773_v6 }
 0x1d9   : > { %1199 = vst.msk [vmem:[#allocation3 + $0x1] sm:$0x1] %vm923_vm13, %v772_v8  ;;  %v791_v15 = vmul.f32 1.442695, %v781_v9  ;;  %v780_v32 = vsub.f32 %v740_v5, %v772_v8 }
 0x1db   : > { %1995 = vpow2.f32 %v791_v15  ;;  %v789_v36 = vmul.f32 1.442695, %v780_v32 }
 0x1dc   : > { %v758_v12 = vpop.xlane.xlu0 %757  ;;  %v767_v13 = vpop.xlane.xlu2 %766 }
 0x1dd   : > { %v774_v16 = vmax.f32 %v742_v10, %v758_v12  ;;  %v2676_v17 = vmax.f32 %v2671_v11, %v767_v13 }
 0x1de   : > { %v764_v18 = vpop.xlane.xlu1 %763 }
 0x1df   : > { %1201 = vst.msk [vmem:[#allocation3 + $0x3] sm:$0x1] %vm923_vm13, %v774_v16  ;;  %v785_v19 = vsub.f32 %v2671_v11, %v2676_v17  ;;  %811 = vperm.xlu2 %1992, %v772_v8   ;;  %823 = vperm.xlu0 %1993, %v774_v16   ;;  %v2682_v20 = vmax.f32 %v2673_v14, %v764_v18  ;;  %v876_v11 = vld [vmem:[#allocation4 + $0x1] sm:$0x1] }
 0x1e0   : > { %1204 = vst.msk [vmem:[#allocation3 + $0x6] sm:$0x1] %vm923_vm13, %v2676_v17  ;;  %v782_v37 = vsub.f32 %v742_v10, %v774_v16 }
 0x1e1   : > { %v784_v21 = vsub.f32 %v2673_v14, %v2682_v20  ;;  %1203 = vst.msk [vmem:[#allocation3 + $0x5] sm:$0x1] %vm923_vm13, %v2682_v20  ;;  %v2695_v28 = vpop.eup %1995  ;;  %v877_v14 = vld [vmem:[#allocation4 + $0x2] sm:$0x1] }
 0x1e2   : > { %v793_v39 = vmul.f32 1.442695, %v782_v37 }
 0x1e4   : > { %v770_v24 = vpop.xlane.xlu2 %769  ;;  %v761_v25 = vpop.xlane.xlu0 %760 }
 0x1e5   : > { %v2693_v26 = vmax.f32 %v2690_v22, %v770_v24  ;;  %v775_v27 = vmax.f32 %v743_v23, %v761_v25 }
 0x1e7   : > { %v786_v30 = vsub.f32 %v2690_v22, %v2693_v26  ;;  %1205 = vst.msk [vmem:[#allocation3 + $0x7] sm:$0x1] %vm923_vm13, %v2693_v26  ;;  %v783_v31 = vsub.f32 %v743_v23, %v775_v27  ;;  %847 = vperm.xlu1 %1994, %v2693_v26   ;;  %841 = vperm.xlu2 %1992, %v2676_v17  }
 0x1e8   : > { %1202 = vst.msk [vmem:[#allocation3 + $0x4] sm:$0x1] %vm923_vm13, %v775_v27  ;;  %954 = vperm.xlu0 %1993, %v2695_v28  }
 0x1e9   : > { %v795_v33 = vmul.f32 1.442695, %v783_v31 }
 0x1eb   : > { %1997 = vpow2.f32 %v795_v33 }
 0x1ec   : > { %1999 = vpow2.f32 %v787_v35 }
 0x1ed   : > { %2001 = vpow2.f32 %v789_v36 }
 0x1ee   : > { %2003 = vpow2.f32 %v793_v39  ;;  %v797_v39 = vmul.f32 1.442695, %v784_v21 }
 0x1ef   : > { %835 = vperm.xlu1 %1994, %v2682_v20   ;;  %829 = vperm.xlu2 %1992, %v775_v27   ;;  %v885_v20 = vmul.f32 %v2695_v28, %v877_v14  ;;  %v875_v28 = vld [vmem:[#allocation4] sm:$0x1] }
 0x1f1   : > { %v2706_v38 = vpop.eup %1997 }
 0x1f2   : > { %966 = vperm.xlu0 %1993, %v2706_v38   ;;  %v2709_v41 = vpop.eup %1999 }
 0x1f3   : > { %v2711_v43 = vpop.eup %2001 }
 0x1f4   : > { %v2715_v44 = vpop.eup %2003  ;;  %v884_v17 = vmul.f32 %v2711_v43, %v876_v11 }
 0x1f7   : > { %942 = vperm.xlu1 %1994, %v2709_v41   ;;  %948 = vperm.xlu2 %1992, %v2711_v43  }
 0x1ff   : > { %960 = vperm.xlu1 %1994, %v2715_v44  }
 0x231   : > { %v818_v45 = vpop.permute.xlu2 %817 }
 0x232   : > { %v820_v47 = vperm.slane %v818_v45, 0 }
 0x234   : > { %v853_v48 = vsub.f32 %v2621_v42, %v820_v47  ;;  %v799_v47 = vmul.f32 1.442695, %v785_v19 }
 0x236   : > { %v863_v49 = vmul.f32 1.442695, %v853_v48 }
 0x238   : > { %2005 = vpow2.f32 %v863_v49 }
 0x239   : > { %v812_v51 = vpop.permute.xlu2 %811 }
 0x23a   : > { %v814_v52 = vperm.slane %v812_v51, 0 }
 0x23c   : > { %v852_v54 = vsub.f32 %v2616_v40, %v814_v52 }
 0x23e   : > { %v2006_v55 = vpop.eup %2005  ;;  %v861_v57 = vmul.f32 1.442695, %v852_v54 }
 0x23f   : > { %1852 = vmatmul.msk.f32.vlgmr.msra.gmra.mxu2 %vm996_vm14, %v2006_v55  ;;  %v897_v58 = vsel %vm3036_vm5, %v2006_v55, 0.0 }
 0x240   : > { %2007 = vpow2.f32 %v861_v57  ;;  %898 = vadd.xlane.f32.xlu1 %v897_v58  ;;  %v934_v58 = vld [vmem:[#allocation5 + $0x2] sm:$0x1] }
 0x241   : > { %v842_v60 = vpop.permute.xlu2 %841 }
 0x242   : > { %v844_v61 = vperm.slane %v842_v60, 0 }
 0x243   : > { %v806_v62 = vpop.permute.xlu1 %805 }
 0x244   : > { %v857_v42 = vsub.f32 %v2650_v56, %v844_v61  ;;  %v808_v63 = vperm.slane %v806_v62, 0  ;;  %v933_v61 = vld [vmem:[#allocation5 + $0x1] sm:$0x1] }
 0x246   : > { %v2008_v0 = vpop.eup %2007  ;;  %v871_v1 = vmul.f32 1.442695, %v857_v42  ;;  %v851_v2 = vsub.f32 %v2604_v34, %v808_v63 }
 0x247   : > { %1851 = vmatmul.msk.f32.vlgmr.msra.gmra.mxu1 %vm996_vm14, %v2008_v0  ;;  %v894_v40 = vsel %vm3036_vm5, %v2008_v0, 0.0 }
 0x248   : > { %2009 = vpow2.f32 %v871_v1  ;;  %v859_v3 = vmul.f32 1.442695, %v851_v2  ;;  %895 = vadd.xlane.f32.xlu2 %v894_v40  ;;  %v883_v2 = vmul.f32 %v2709_v41, %v875_v28  ;;  %v878_v41 = vld [vmem:[#allocation4 + $0x3] sm:$0x1] }
 0x249   : > { %v830_v4 = vpop.permute.xlu2 %829 }
 0x24a   : > { %2011 = vpow2.f32 %v859_v3  ;;  %v832_v5 = vperm.slane %v830_v4, 0 }
 0x24c   : > { %v855_v6 = vsub.f32 %v2637_v50, %v832_v5  ;;  %v879_v5 = vld [vmem:[#allocation4 + $0x4] sm:$0x1] }
 0x24e   : > { %v2010_v7 = vpop.eup %2009  ;;  %v867_v8 = vmul.f32 1.442695, %v855_v6  ;;  %v932_v6 = vld [vmem:[#allocation5] sm:$0x1] }
 0x24f   : > { %1856 = vmatmul.msk.f32.vlgmr.msrb.gmra.mxu2 %vm996_vm14, %v2010_v7 }
 0x250   : > { %v2012_v56 = vpop.eup %2011  ;;  %2013 = vpow2.f32 %v867_v8 }
 0x251   : > { %1850 = vmatmul.msk.f32.vlgmr.msra.gmra.mxu0 %vm996_vm14, %v2012_v56  ;;  %v824_v34 = vpop.permute.xlu0 %823  ;;  %v891_v9 = vsel %vm3036_vm5, %v2012_v56, 0.0  ;;  %v949_v21 = vpop.permute.xlu2 %948 }
 0x252   : > { %v826_v10 = vperm.slane %v824_v34, 0  ;;  %892 = vadd.xlane.f32.xlu0 %v891_v9  ;;  %v951_v60 = vperm.slane %v949_v21, 0 }
 0x254   : > { %v854_v12 = vsub.f32 %v2629_v46, %v826_v10  ;;  %v989_v0 = vmul.f32 %v951_v60, %v933_v61 }
 0x256   : > { %v2014_v13 = vpop.eup %2013  ;;  %v865_v15 = vmul.f32 1.442695, %v854_v12 }
 0x257   : > { %v903_v50 = vsel %vm3036_vm5, %v2014_v13, 0.0 }
 0x258   : > { %2015 = vpow2.f32 %v865_v15  ;;  %v936_v15 = vld [vmem:[#allocation5 + $0x4] sm:$0x1] }
 0x259   : > { %v848_v16 = vpop.permute.xlu1 %847  ;;  %1854 = vmatmul.msk.f32.vlgmr.msrb.gmra.mxu0 %vm996_vm14, %v2014_v13  ;;  %v886_v13 = vmul.f32 %v2715_v44, %v878_v41 }
 0x25a   : > { %v850_v18 = vperm.slane %v848_v16, 0  ;;  %904 = vadd.xlane.f32.xlu0 %v903_v50  ;;  %v955_v52 = vpop.permute.xlu0 %954 }
 0x25b   : > { %v957_v55 = vperm.slane %v955_v52, 0 }
 0x25c   : > { %v858_v23 = vsub.f32 %v2657_v59, %v850_v18  ;;  %v909_v59 = vsel %vm3036_vm5, %v2010_v7, 0.0  ;;  %v887_v7 = vmul.f32 %v2706_v38, %v879_v5 }
 0x25d   : > { %v990_v62 = vmul.f32 %v957_v55, %v934_v58 }
 0x25e   : > { %v2016_v24 = vpop.eup %2015  ;;  %v873_v25 = vmul.f32 1.442695, %v858_v23 }
 0x25f   : > { %1853 = vmatmul.msk.f32.vlgmr.msra.gmra.mxu3 %vm996_vm14, %v2016_v24  ;;  %v900_v27 = vsel %vm3036_vm5, %v2016_v24, 0.0  ;;  %v881_v24 = vld [vmem:[#allocation4 + $0x6] sm:$0x1] }
 0x260   : > { %2017 = vpow2.f32 %v873_v25  ;;  %901 = vadd.xlane.f32.xlu2 %v900_v27  ;;  %v882_v25 = vld [vmem:[#allocation4 + $0x7] sm:$0x1] }
 0x261   : > { %v836_v46 = vpop.permute.xlu1 %835 }
 0x262   : > { %v838_v29 = vperm.slane %v836_v46, 0 }
 0x264   : > { %v856_v31 = vsub.f32 %v2643_v53, %v838_v29  ;;  %v801_v53 = vmul.f32 1.442695, %v786_v30  ;;  %v967_v57 = vpop.permute.xlu0 %966 }
 0x265   : > { %v969_v12 = vperm.slane %v967_v57, 0 }
 0x266   : > { %v2018_v32 = vpop.eup %2017  ;;  %v869_v33 = vmul.f32 1.442695, %v856_v31 }
 0x267   : > { %1857 = vmatmul.msk.f32.vlgmr.msrb.gmra.mxu3 %vm996_vm14, %v2018_v32  ;;  %v912_v35 = vsel %vm3036_vm5, %v2018_v32, 0.0  ;;  %v992_v18 = vmul.f32 %v969_v12, %v936_v15 }
 0x268   : > { %2019 = vpow2.f32 %v869_v33  ;;  %913 = vadd.xlane.f32.xlu0 %v912_v35  ;;  %910 = vadd.xlane.f32.xlu2 %v909_v59  ;;  %v935_v35 = vld [vmem:[#allocation5 + $0x3] sm:$0x1]  ;;  %v880_v59 = vld [vmem:[#allocation4 + $0x5] sm:$0x1] }
 0x269   : > { %2021 = vpow2.f32 %v801_v53  ;;  %v943_v26 = vpop.permute.xlu1 %942 }
 0x26a   : > { %2023 = vpow2.f32 %v797_v39  ;;  %v945_v4 = vperm.slane %v943_v26, 0 }
 0x26b   : > { %2025 = vpow2.f32 %v799_v47 }
 0x26c   : > { %v988_v56 = vmul.f32 %v945_v4, %v932_v6 }
 0x26e   : > { %v2020_v36 = vpop.eup %2019 }
 0x26f   : > { %1855 = vmatmul.msk.f32.vlgmr.msrb.gmra.mxu1 %vm996_vm14, %v2020_v36  ;;  %v906_v37 = vsel %vm3036_vm5, %v2020_v36, 0.0  ;;  %v2748_v45 = vpop.eup %2021 }
 0x270   : > { %907 = vadd.xlane.f32.xlu1 %v906_v37  ;;  %v2754_v48 = vpop.eup %2023  ;;  %v890_v46 = vmul.f32 %v2748_v45, %v882_v25 }
 0x271   : > { %v2026_v22 = vpop.eup %2025  ;;  %v2757_v30 = vpop.permute.xlu1 %960  ;;  %v888_v53 = vmul.f32 %v2754_v48, %v880_v59 }
 0x272   : > { %v889_v27 = vmul.f32 %v2026_v22, %v881_v24  ;;  %v963_v44 = vperm.slane %v2757_v30, 0  ;;  %v937_v30 = vld [vmem:[#allocation5 + $0x5] sm:$0x1] }
 0x274   : > { %v991_v36 = vmul.f32 %v963_v44, %v935_v35 }
 0x27c   : > { %984 = vperm.xlu0 %1993, %v2748_v45  }
 0x280   : > { %972 = vperm.xlu2 %1992, %v2754_v48  }
 0x289   : > { %978 = vperm.xlu1 %1994, %v2026_v22  }
 0x2b3   : > { %v899_v49 = vpop.xlane.xlu1 %898 }
 0x2b4   : > { %v917_v51 = vadd.f32 %v899_v49, %v885_v20  ;;  %v939_v49 = vld [vmem:[#allocation5 + $0x7] sm:$0x1] }
 0x2b6   : > { %926 = vst.msk [vmem:[#allocation4 + $0x2] sm:$0x1] %vm923_vm13, %v917_v51 }
 0x2bb   : > { %v896_v19 = vpop.xlane.xlu2 %895 }
 0x2bc   : > { %v916_v54 = vadd.f32 %v896_v19, %v884_v17  ;;  %v938_v19 = vld [vmem:[#allocation5 + $0x6] sm:$0x1] }
 0x2be   : > { %925 = vst.msk [vmem:[#allocation4 + $0x1] sm:$0x1] %vm923_vm13, %v916_v54 }
 0x2c2   : > { %v1063_v42 = vpop.f32.mrf.mxu2 }
 0x2c3   : > { %v1183_v63 = vadd.f32 %v1063_v42, %v990_v62 }
 0x2c4   : > { %v1040_v1 = vpop.f32.mrf.mxu1 }
 0x2c5   : > { %1192 = vst.msk [vmem:[#allocation5 + $0x2] sm:$0x1] %vm1189_vm15, %v1183_v63  ;;  %v1182_v43 = vadd.f32 %v1040_v1, %v989_v0  ;;  %v893_v40 = vpop.xlane.xlu0 %892 }
 0x2c6   : > { %v915_v3 = vadd.f32 %v893_v40, %v883_v2 }
 0x2c7   : > { %1191 = vst.msk [vmem:[#allocation5 + $0x1] sm:$0x1] %vm1189_vm15, %v1182_v43 }
 0x2c8   : > { %924 = vst.msk [vmem:[#allocation4] sm:$0x1] %vm923_vm13, %v915_v3 }
 0x2cd   : > { %v905_v8 = vpop.xlane.xlu0 %904 }
 0x2ce   : > { %v919_v34 = vadd.f32 %v905_v8, %v887_v7  ;;  %v1017_v9 = vpop.f32.mrf.mxu0 }
 0x2cf   : > { %v1181_v10 = vadd.f32 %v1017_v9, %v988_v56 }
 0x2d0   : > { %928 = vst.msk [vmem:[#allocation4 + $0x4] sm:$0x1] %vm923_vm13, %v919_v34 }
 0x2d1   : > { %1190 = vst.msk [vmem:[#allocation5] sm:$0x1] %vm1189_vm15, %v1181_v10 }
 0x2d2   : > { %v1155_v58 = vpop.f32.mrf.mxu2 }
 0x2d3   : > { %v902_v16 = vpop.xlane.xlu2 %901 }
 0x2d4   : > { %v918_v50 = vadd.f32 %v902_v16, %v886_v13 }
 0x2d6   : > { %927 = vst.msk [vmem:[#allocation4 + $0x3] sm:$0x1] %vm923_vm13, %v918_v50  ;;  %v1109_v38 = vpop.f32.mrf.mxu0 }
 0x2d7   : > { %v1185_v23 = vadd.f32 %v1109_v38, %v992_v18 }
 0x2d9   : > { %1194 = vst.msk [vmem:[#allocation5 + $0x4] sm:$0x1] %vm1189_vm15, %v1185_v23 }
 0x2db   : > { %v911_v29 = vpop.xlane.xlu2 %910  ;;  %v914_v31 = vpop.xlane.xlu0 %913 }
 0x2dc   : > { %v921_v32 = vadd.f32 %v911_v29, %v889_v27  ;;  %v922_v33 = vadd.f32 %v914_v31, %v890_v46 }
 0x2de   : > { %930 = vst.msk [vmem:[#allocation4 + $0x6] sm:$0x1] %vm923_vm13, %v921_v32 }
 0x2df   : > { %931 = vst.msk [vmem:[#allocation4 + $0x7] sm:$0x1] %vm923_vm13, %v922_v33 }
 0x2e2   : > { %v1086_v37 = vpop.f32.mrf.mxu3 }
 0x2e3   : > { %v1184_v39 = vadd.f32 %v1086_v37, %v991_v36  ;;  %v908_v47 = vpop.xlane.xlu1 %907  ;;  %v973_v45 = vpop.permute.xlu2 %972 }
 0x2e4   : > { %v920_v22 = vadd.f32 %v908_v47, %v888_v53  ;;  %v975_v26 = vperm.slane %v973_v45, 0 }
 0x2e5   : > { %1193 = vst.msk [vmem:[#allocation5 + $0x3] sm:$0x1] %vm1189_vm15, %v1184_v39 }
 0x2e6   : > { %929 = vst.msk [vmem:[#allocation4 + $0x5] sm:$0x1] %vm923_vm13, %v920_v22  ;;  %v993_v14 = vmul.f32 %v975_v26, %v937_v30 }
 0x2ea   : > { %v1178_v48 = vpop.f32.mrf.mxu3 }
 0x2ec   : > { %v1132_v20 = vpop.f32.mrf.mxu1 }
 0x2ed   : > { %v1186_v21 = vadd.f32 %v1132_v20, %v993_v14 }
 0x2ee   : > { %v985_v51 = vpop.permute.xlu0 %984 }
 0x2ef   : > { %1195 = vst.msk [vmem:[#allocation5 + $0x5] sm:$0x1] %vm1189_vm15, %v1186_v21  ;;  %v987_v52 = vperm.slane %v985_v51, 0 }
 0x2f1   : > { %v995_v11 = vmul.f32 %v987_v52, %v939_v49 }
 0x2f3   : > { %v1188_v17 = vadd.f32 %v1178_v48, %v995_v11 }
 0x2f5   : > { %1197 = vst.msk [vmem:[#allocation5 + $0x7] sm:$0x1] %vm1189_vm15, %v1188_v17 }
 0x2fb   : > { %v979_v54 = vpop.permute.xlu1 %978 }
 0x2fc   : > { %v981_v55 = vperm.slane %v979_v54, 0 }
 0x2fe   : > { %v994_v57 = vmul.f32 %v981_v55, %v938_v19  ;;  %1209 = sbr.rel (%p1858_p1) target bundleno = 1077 (0x435), region = 68 }
 0x300   : > { %v1187_v60 = vadd.f32 %v1155_v58, %v994_v57 }
 0x302   : > { %1196 = vst.msk [vmem:[#allocation5 + $0x6] sm:$0x1] %vm1189_vm15, %v1187_v60 }
 0x303   : > { %v1397_v61 = vld [vmem:[#allocation14 + $0x18] sm:$0xff]  ;;  %v2366_v28 = vmov 0   ;;  %v2815_v46 = vld [vmem:[#allocation14 + $0x10] sm:$0xff]  ;;  %v2848_v20 = vld [vmem:[#allocation14 + $0x8] sm:$0xff] }
 0x304   : > { %v1213_v62 = vld [vmem:[#allocation4 + $0x3] sm:$0x1]  ;;  %1409 = vrot.lane.b32.xlu0 %v1397_v61, %s2365_s30  ;;  %2029 = vset.pattern.permute.xlu2 %v2366_v28  ;;  %v1211_v63 = vld [vmem:[#allocation4 + $0x1] sm:$0x1]  ;;  %v1210_v2 = vld [vmem:[#allocation4] sm:$0x1] }
 0x305   : > { %2030 = vrcp.f32 %v1213_v62  ;;  %v1269_v42 = vand.u32 2147483647, %v1213_v62  ;;  %2028 = vset.pattern.permute.xlu1 %v2366_v28  ;;  %2027 = vset.pattern.permute.xlu0 %v2366_v28  ;;  %v1271_v0 = vand.u32 2147483648, %v1213_v62  ;;  %v1241_v1 = vand.u32 2147483647, %v1211_v63 }
 0x306   : > { %2032 = vrcp.f32 %v1211_v63  ;;  %v1243_v43 = vand.u32 2147483648, %v1211_v63  ;;  %v2785_v40 = vld [vmem:[#allocation4 + $0x4] sm:$0x1]  ;;  %v2787_v3 = vld [vmem:[#allocation4 + $0x2] sm:$0x1]  ;;  %1864 = vmatpush.xpose.msk.msra.mxu1 %vm495_vm3, %v1397_v61  ;;  %vm1265_vm0 = vweird.f32 %v1213_v62  ;;  %vm1237_vm1 = vweird.f32 %v1211_v63 }
 0x307   : > { %2034 = vrcp.f32 %v1210_v2  ;;  %v1227_v4 = vand.u32 2147483647, %v1210_v2  ;;  %v1229_v5 = vand.u32 2147483648, %v1210_v2  ;;  %v2791_v6 = vld [vmem:[#allocation4 + $0x7] sm:$0x1]  ;;  %vm2793_vm2 = vcmp.eq.f32.partialorder %v1269_v42, 8.507059e+37 }
 0x308   : > { %2036 = vrcp.f32 %v2785_v40  ;;  %v1272_v8 = vor.u32 1.1754944e-38, %v1271_v0  ;;  %vm1223_vm4 = vweird.f32 %v1210_v2  ;;  %vm2798_vm6 = vcmp.eq.f32.partialorder %v1241_v1, 8.507059e+37  ;;  %v2810_v16 = vld [vmem:[#allocation4 + $0x6] sm:$0x1]  ;;  %v1215_v0 = vld [vmem:[#allocation4 + $0x5] sm:$0x1] }
 0x309   : > { %2038 = vrcp.f32 %v2787_v3  ;;  %v1244_v9 = vor.u32 1.1754944e-38, %v1243_v43  ;;  %vm1279_vm7 = vweird.f32 %v2785_v40  ;;  %v1283_v10 = vand.u32 2147483647, %v2785_v40  ;;  %v1394_v1 = vld [vmem:[#allocation14] sm:$0xff]  ;;  %v1516_v36 = vld [vmem:[#allocation3 + $0x2] sm:$0x1] }
 0x30a   : > { %vm2804_vm8 = vcmp.eq.f32.partialorder %v1227_v4, 8.507059e+37  ;;  %v1285_v15 = vand.u32 2147483648, %v2785_v40  ;;  %2040 = vrcp.f32 %v2791_v6  ;;  %v1230_v38 = vor.u32 1.1754944e-38, %v1229_v5  ;;  %1865 = vmatpush.xpose.msk.msra.mxu1 %vm495_vm3, %v2815_v46  ;;  %v1520_v26 = vld [vmem:[#allocation3 + $0x6] sm:$0x1] }
 0x30b   : > { %v2031_v56 = vpop.eup %2030  ;;  %vm1251_vm9 = vweird.f32 %v2787_v3  ;;  %v1255_v23 = vand.u32 2147483647, %v2787_v3  ;;  %v1257_v27 = vand.u32 2147483648, %v2787_v3  ;;  %2042 = vrcp.f32 %v2810_v16  ;;  %v1334_v49 = vld [vmem:[#allocation5 + $0x4] sm:$0x1] }
 0x30c   : > { %v2033_v41 = vpop.eup %2032  ;;  %v1261_v12 = vmul.f32 %v2031_v56, %v1213_v62  ;;  %vm1266_vm10 = vweird.f32 %v2031_v56  ;;  %vm2827_vm14 = vcmp.eq.f32.partialorder %v1283_v10, 8.507059e+37  ;;  %v1325_v39 = vand.u32 2147483647, %v2791_v6  ;;  %v1331_v57 = vld [vmem:[#allocation5 + $0x1] sm:$0x1] }
 0x30d   : > { %v2035_v50 = vpop.eup %2034  ;;  %v1233_v18 = vmul.f32 %v2033_v41, %v1211_v63  ;;  %vm1238_vm11 = vweird.f32 %v2033_v41  ;;  %vm2833_vm15 = vmor %vm1265_vm0, %vm1266_vm10  ;;  %v1327_v47 = vand.u32 2147483648, %v2791_v6  ;;  %v1286_v43 = vor.u32 1.1754944e-38, %v1285_v15 }
 0x30e   : > { %v1262_v24 = vsub.f32 1.0, %v1261_v12  ;;  %v1219_v25 = vmul.f32 %v2035_v50, %v1210_v2  ;;  %v2817_v29 = vpop.eup %2036  ;;  %vm1224_vm13 = vweird.f32 %v2035_v50  ;;  %vm2843_vm5 = vmor %vm1237_vm1, %vm1238_vm11  ;;  %1866 = vmatpush.xpose.msk.msra.mxu1 %vm495_vm3, %v2848_v20  ;;  %2044 = vrcp.f32 %v1215_v0 }
 0x30f   : > { %v1234_v31 = vsub.f32 1.0, %v1233_v18  ;;  %v2823_v32 = vpop.eup %2038  ;;  %v1275_v35 = vmul.f32 %v2817_v29, %v2785_v40  ;;  %vm1280_vm0 = vweird.f32 %v2817_v29  ;;  %vm2852_vm10 = vmor %vm1223_vm4, %vm1224_vm13  ;;  %v1328_v10 = vor.u32 1.1754944e-38, %v1327_v47  ;;  %v1518_v47 = vld [vmem:[#allocation3 + $0x4] sm:$0x1] }
 0x310   : > { %v1263_v33 = vmul.f32 %v2031_v56, %v1262_v24  ;;  %v1220_v44 = vsub.f32 1.0, %v1219_v25  ;;  %v1247_v53 = vmul.f32 %v2823_v32, %v2787_v3  ;;  %v2041_v22 = vpop.eup %2040  ;;  %vm1252_vm12 = vweird.f32 %v2823_v32  ;;  %vm2871_vm4 = vmor %vm1279_vm7, %vm1280_vm0 }
 0x311   : > { %v1235_v37 = vmul.f32 %v2033_v41, %v1234_v31  ;;  %v1276_v14 = vsub.f32 1.0, %v1275_v35  ;;  %v1317_v52 = vmul.f32 %v2041_v22, %v2791_v6  ;;  %vm1322_vm1 = vweird.f32 %v2041_v22  ;;  %v2043_v19 = vpop.eup %2042 }
 0x312   : > { %v1264_v45 = vadd.f32 %v2031_v56, %v1263_v33  ;;  %v1221_v30 = vmul.f32 %v2035_v50, %v1220_v44  ;;  %v1248_v51 = vsub.f32 1.0, %v1247_v53  ;;  %v1303_v63 = vmul.f32 %v2043_v19, %v2810_v16  ;;  %1867 = vmatpush.xpose.msk.msra.mxu1 %vm495_vm3, %v1394_v1  ;;  %v1519_v53 = vld [vmem:[#allocation3 + $0x5] sm:$0x1] }
 0x313   : > { %v1236_v21 = vadd.f32 %v2033_v41, %v1235_v37  ;;  %v1277_v17 = vmul.f32 %v2817_v29, %v1276_v14  ;;  %v1318_v60 = vsub.f32 1.0, %v1317_v52  ;;  %vm1308_vm11 = vweird.f32 %v2043_v19  ;;  %v1515_v37 = vld [vmem:[#allocation3 + $0x1] sm:$0x1] }
 0x314   : > { %v1268_v11 = vsel %vm2833_vm15, %v2031_v56, %v1264_v45  ;;  %v1222_v48 = vadd.f32 %v2035_v50, %v1221_v30  ;;  %v1249_v58 = vmul.f32 %v2823_v32, %v1248_v51  ;;  %v1304_v56 = vsub.f32 1.0, %v1303_v63  ;;  %v1521_v45 = vld [vmem:[#allocation3 + $0x7] sm:$0x1]  ;;  %v1333_v30 = vld [vmem:[#allocation5 + $0x3] sm:$0x1] }
 0x315   : > { %v1273_v54 = vsel %vm2793_vm2, %v1272_v8, %v1268_v11  ;;  %v1240_v55 = vsel %vm2843_vm5, %v2033_v41, %v1236_v21  ;;  %v1278_v28 = vadd.f32 %v2817_v29, %v1277_v17  ;;  %vm2885_vm5 = vmor %vm1251_vm9, %vm1252_vm12  ;;  %v1319_v5 = vmul.f32 %v2041_v22, %v1318_v60 }
 0x316   : > { %1358 = vperm.xlu2 %2029, %v1273_v54   ;;  %v1245_v61 = vsel %vm2798_vm6, %v1244_v9, %v1240_v55  ;;  %v1226_v62 = vsel %vm2852_vm10, %v2035_v50, %v1222_v48  ;;  %v1250_v4 = vadd.f32 %v2823_v32, %v1249_v58  ;;  %vm1256_vm2 = vcmp.eq.f32.partialorder %v1255_v23, 8.507059e+37  ;;  %v1336_v48 = vld [vmem:[#allocation5 + $0x6] sm:$0x1] }
 0x317   : > { %1346 = vperm.xlu1 %2028, %v1245_v61   ;;  %v1231_v2 = vsel %vm2804_vm8, %v1230_v38, %v1226_v62  ;;  %v1282_v7 = vsel %vm2871_vm4, %v2817_v29, %v1278_v28  ;;  %v1258_v8 = vor.u32 1.1754944e-38, %v1257_v27  ;;  %vm3071_vm6 = vweird.f32 %v2791_v6  ;;  %v2045_v38 = vpop.eup %2044  ;;  %v1330_v61 = vld [vmem:[#allocation5] sm:$0x1] }
 0x318   : > { %1340 = vperm.xlu0 %2027, %v1231_v2   ;;  %vm2904_vm7 = vmor %vm3071_vm6, %vm1322_vm1  ;;  %v1254_v34 = vsel %vm2885_vm5, %v2823_v32, %v1250_v4  ;;  %v1320_v9 = vadd.f32 %v2041_v22, %v1319_v5  ;;  %vm1326_vm8 = vcmp.eq.f32.partialorder %v1325_v39, 8.507059e+37  ;;  %v1305_v41 = vmul.f32 %v2043_v19, %v1304_v56  ;;  %v1514_v39 = vld [vmem:[#allocation3] sm:$0x1]  ;;  %v1332_v4 = vld [vmem:[#allocation5 + $0x2] sm:$0x1] }
 0x319   : > { %vm1307_vm9 = vweird.f32 %v2810_v16  ;;  %v1287_v3 = vsel %vm2827_vm14, %v1286_v43, %v1282_v7  ;;  %v1313_v12 = vand.u32 2147483648, %v2810_v16  ;;  %v1259_v13 = vsel %vm1256_vm2, %v1258_v8, %v1254_v34  ;;  %v1337_v8 = vld [vmem:[#allocation5 + $0x7] sm:$0x1] }
 0x31a   : > { %v1324_v6 = vsel %vm2904_vm7, %v2041_v22, %v1320_v9  ;;  %v1306_v15 = vadd.f32 %v2043_v19, %v1305_v41  ;;  %v1311_v50 = vand.u32 2147483647, %v2810_v16  ;;  %vm1309_vm12 = vmor %vm1307_vm9, %vm1308_vm11  ;;  %v1289_v25 = vmul.f32 %v2045_v38, %v1215_v0  ;;  %v1517_v22 = vld [vmem:[#allocation3 + $0x3] sm:$0x1] }
 0x31b   : > { %v1329_v18 = vsel %vm1326_vm8, %v1328_v10, %v1324_v6  ;;  %v1314_v23 = vor.u32 1.1754944e-38, %v1313_v12  ;;  %v1299_v27 = vand.u32 2147483648, %v1215_v0  ;;  %vm1293_vm14 = vweird.f32 %v1215_v0  ;;  %v1502_v12 = vld [vmem:[#allocation16 + $0x4] sm:$0x1] }
 0x31c   : > { %v1310_v24 = vsel %vm1309_vm12, %v2043_v19, %v1306_v15  ;;  %vm1312_vm13 = vcmp.eq.f32.partialorder %v1311_v50, 8.507059e+37  ;;  %v1290_v29 = vsub.f32 1.0, %v1289_v25  ;;  %vm1294_vm15 = vweird.f32 %v2045_v38 }
 0x31d   : > { %v1297_v31 = vand.u32 2147483647, %v1215_v0  ;;  %v1315_v32 = vsel %vm1312_vm13, %v1314_v23, %v1310_v24  ;;  %vm1295_vm0 = vmor %vm1293_vm14, %vm1294_vm15  ;;  %v1300_v44 = vor.u32 1.1754944e-38, %v1299_v27  ;;  %v1499_v0 = vld [vmem:[#allocation16 + $0x1] sm:$0x1]  ;;  %vm3074_vm1 = vcmask 57344  }
 0x31e   : > { %1364 = vperm.xlu2 %2029, %v1287_v3   ;;  %v1291_v33 = vmul.f32 %v2045_v38, %v1290_v29  ;;  %v1335_v24 = vld [vmem:[#allocation5 + $0x5] sm:$0x1]  ;;  %vm3075_vm4 = vmmov %vm3074_vm1 }
 0x31f   : > { %1352 = vperm.xlu1 %2028, %v1259_v13   ;;  %vm1298_vm10 = vcmp.eq.f32.partialorder %v1297_v31, 8.507059e+37  ;;  %v1510_v13 = vld [vmem:[#allocation16 + $0xc] sm:$0x1]  ;;  %vm3076_vm5 = vmmov %vm3074_vm1 }
 0x320   : > { %1382 = vperm.xlu0 %2027, %v1329_v18   ;;  %v1292_v16 = vadd.f32 %v2045_v38, %v1291_v33  ;;  %vm3077_vm2 = vmmov %vm3074_vm1 }
 0x321   : > { %vm3078_vm6 = vmmov %vm3074_vm1 }
 0x322   : > { %v1296_v35 = vsel %vm1295_vm0, %v2045_v38, %v1292_v16  ;;  %vm3079_vm7 = vmmov %vm3074_vm1 }
 0x323   : > { %v1301_v59 = vsel %vm1298_vm10, %v1300_v44, %v1296_v35  ;;  %vm3080_vm8 = vmmov %vm3074_vm1 }
 0x324   : > { %vm3081_vm9 = vmmov %vm3074_vm1 }
 0x325   : > { %vm3082_vm11 = vmmov %vm3074_vm1 }
 0x326   : > { %1376 = vperm.xlu2 %2029, %v1315_v32   ;;  %vm3083_vm12 = vmmov %vm3074_vm1 }
 0x327   : > { %1370 = vperm.xlu1 %2028, %v1301_v59   ;;  %v1505_v59 = vld [vmem:[#allocation16 + $0x7] sm:$0x1]  ;;  %vm3084_vm13 = vmmov %vm3074_vm1 }
 0x328   : > { %1403 = vrot.lane.b32.xlu0 %v1394_v1, %s2365_s30  ;;  %v1507_v1 = vld [vmem:[#allocation16 + $0x9] sm:$0x1]  ;;  %vm3085_vm14 = vmmov %vm3074_vm1 }
 0x329   : > { %vm3086_vm15 = vmmov %vm3074_vm1 }
 0x32a   : > { %vm3087_vm0 = vmmov %vm3074_vm1 }
 0x32b   : > { %vm3088_vm10 = vmmov %vm3087_vm0 }
 0x32e   : > { %1405 = vrot.lane.b32.xlu2 %v2848_v20, %s2365_s30 }
 0x32f   : > { %1407 = vrot.lane.b32.xlu1 %v2815_v46, %s2365_s30 }
 0x330   : > { %1536 = vperm.xlu0 %2027, %v1516_v36   ;;  %v1513_v36 = vld [vmem:[#allocation16 + $0xf] sm:$0x1] }
 0x336   : > { %1530 = vperm.xlu2 %2029, %v1515_v37  }
 0x337   : > { %1524 = vperm.xlu1 %2028, %v1514_v39   ;;  %v1500_v39 = vld [vmem:[#allocation16 + $0x2] sm:$0x1] }
 0x338   : > { %1554 = vperm.xlu0 %2027, %v1519_v53  }
 0x33e   : > { %1548 = vperm.xlu2 %2029, %v1518_v47   ;;  %v1508_v47 = vld [vmem:[#allocation16 + $0xa] sm:$0x1] }
 0x33f   : > { %1542 = vperm.xlu1 %2028, %v1517_v22  }
 0x346   : > { %1566 = vperm.xlu2 %2029, %v1521_v45  }
 0x347   : > { %1560 = vperm.xlu1 %2028, %v1520_v26  }
 0x370   : > { %v1359_v14 = vpop.permute.xlu2 %1358 }
 0x371   : > { %v2923_v20 = vperm.slane %v1359_v14, 0 }
 0x373   : > { %v1389_v46 = vmul.f32 %v2923_v20, %v1333_v30 }
 0x375   : > { %1456 = vst [vmem:[#allocation1 + $0x3] ss:$9 sm:$0xff] %v1389_v46 }
 0x376   : > { %v1410_v21 = vpop.permute.xlu0 %1409 }
 0x377   : > { %1859 = vmatpush.xpose.msk.msra.mxu0 %vm495_vm3, %v1410_v21 }
 0x378   : > { %v1365_v51 = vpop.permute.xlu2 %1364 }
 0x379   : > { %v2927_v52 = vperm.slane %v1365_v51, 0 }
 0x37b   : > { %v1390_v11 = vmul.f32 %v2927_v52, %v1334_v49 }
 0x37d   : > { %1458 = vst [vmem:[#allocation1 + $0x4] ss:$9 sm:$0xff] %v1390_v11 }
 0x380   : > { %v1377_v17 = vpop.permute.xlu2 %1376 }
 0x381   : > { %v2930_v19 = vperm.slane %v1377_v17, 0 }
 0x383   : > { %v1392_v54 = vmul.f32 %v2930_v19, %v1336_v48 }
 0x385   : > { %1462 = vst [vmem:[#allocation1 + $0x6] ss:$9 sm:$0xff] %v1392_v54 }
 0x388   : > { %v2933_v55 = vpop.permute.xlu2 %1405 }
 0x389   : > { %v1347_v58 = vpop.permute.xlu1 %1346 }
 0x38a   : > { %v1349_v60 = vperm.slane %v1347_v58, 0  ;;  %v1341_v62 = vpop.permute.xlu0 %1340 }
 0x38b   : > { %v2935_v28 = vperm.slane %v1341_v62, 0  ;;  %v1511_v62 = vld [vmem:[#allocation16 + $0xd] sm:$0x1] }
 0x38c   : > { %v1387_v42 = vmul.f32 %v1349_v60, %v1331_v57 }
 0x38d   : > { %v1386_v63 = vmul.f32 %v2935_v28, %v1330_v61  ;;  %v1503_v61 = vld [vmem:[#allocation16 + $0x5] sm:$0x1] }
 0x38e   : > { %1452 = vst [vmem:[#allocation1 + $0x1] ss:$9 sm:$0xff] %v1387_v42 }
 0x38f   : > { %1450 = vst [vmem:[#allocation1] ss:$9 sm:$0xff] %v1386_v63  ;;  %v1498_v63 = vld [vmem:[#allocation16] sm:$0x1] }
 0x390   : > { %v1531_v2 = vpop.permute.xlu2 %1530 }
 0x391   : > { %v1533_v43 = vperm.slane %v1531_v2, 0  ;;  %v1353_v5 = vpop.permute.xlu1 %1352 }
 0x392   : > { %v2938_v7 = vperm.slane %v1353_v5, 0  ;;  %v1383_v40 = vpop.permute.xlu0 %1382 }
 0x393   : > { %v1571_v56 = vsub.f32 %v1499_v0, %v1533_v43  ;;  %v1579_v34 = vsub.f32 %v1507_v1, %v1533_v43  ;;  %v2940_v9 = vperm.slane %v1383_v40, 0  ;;  %v1506_v0 = vld [vmem:[#allocation16 + $0x8] sm:$0x1] }
 0x394   : > { %v1388_v10 = vmul.f32 %v2938_v7, %v1332_v4 }
 0x395   : > { %v1588_v41 = vmul.f32 1.442695, %v1571_v56  ;;  %v1604_v3 = vmul.f32 1.442695, %v1579_v34  ;;  %v1393_v6 = vmul.f32 %v2940_v9, %v1337_v8  ;;  %v1398_v8 = vld [vmem:[#allocation6] sm:$0xff] }
 0x396   : > { %1454 = vst [vmem:[#allocation1 + $0x2] ss:$9 sm:$0xff] %v1388_v10 }
 0x397   : > { %2046 = vpow2.f32 %v1588_v41  ;;  %1464 = vst [vmem:[#allocation1 + $0x7] ss:$9 sm:$0xff] %v1393_v6 }
 0x398   : > { %2048 = vpow2.f32 %v1604_v3  ;;  %v1549_v15 = vpop.permute.xlu2 %1548 }
 0x399   : > { %v1551_v50 = vperm.slane %v1549_v15, 0  ;;  %v1371_v25 = vpop.permute.xlu1 %1370 }
 0x39a   : > { %v1404_v18 = vpop.permute.xlu0 %1403  ;;  %v2944_v32 = vperm.slane %v1371_v25, 0 }
 0x39b   : > { %v1574_v38 = vsub.f32 %v1502_v12, %v1551_v50  ;;  %v1582_v23 = vsub.f32 %v1510_v13, %v1551_v50 }
 0x39c   : > { %v1391_v35 = vmul.f32 %v2944_v32, %v1335_v24 }
 0x39d   : > { %v2047_v27 = vpop.eup %2046  ;;  %v1594_v29 = vmul.f32 1.442695, %v1574_v38  ;;  %v1610_v31 = vmul.f32 1.442695, %v1582_v23  ;;  %v1509_v38 = vld [vmem:[#allocation16 + $0xb] sm:$0x1] }
 0x39e   : > { %v2049_v33 = vpop.eup %2048  ;;  %v1619_v44 = vmul.f32 %v2047_v27, %v1349_v60  ;;  %1460 = vst [vmem:[#allocation1 + $0x5] ss:$9 sm:$0xff] %v1391_v35 }
 0x39f   : > { %v1627_v16 = vmul.f32 %v2049_v33, %v1349_v60  ;;  %2050 = vpow2.f32 %v1594_v29 }
 0x3a0   : > { %1635 = vst.msk [vmem:[#allocation16 + $0x1] sm:$0x1] %vm3074_vm1, %v1619_v44  ;;  %2052 = vpow2.f32 %v1610_v31  ;;  %v1567_v37 = vpop.permute.xlu2 %1566  ;;  %vm3089_vm1 = vmmov %vm3087_vm0 }
 0x3a1   : > { %1643 = vst.msk [vmem:[#allocation16 + $0x9] sm:$0x1] %vm3075_vm4, %v1627_v16  ;;  %v1569_v53 = vperm.slane %v1567_v37, 0  ;;  %v1408_v14 = vpop.permute.xlu1 %1407 }
 0x3a2   : > { %v1537_v22 = vpop.permute.xlu0 %1536  ;;  %1860 = vmatpush.xpose.msk.msra.mxu0 %vm495_vm3, %v1408_v14 }
 0x3a3   : > { %v1577_v45 = vsub.f32 %v1505_v59, %v1569_v53  ;;  %v1585_v26 = vsub.f32 %v1513_v36, %v1569_v53  ;;  %v1539_v30 = vperm.slane %v1537_v22, 0  ;;  %v1504_v53 = vld [vmem:[#allocation16 + $0x6] sm:$0x1] }
 0x3a5   : > { %v2051_v46 = vpop.eup %2050  ;;  %v1600_v21 = vmul.f32 1.442695, %v1577_v45  ;;  %v1616_v49 = vmul.f32 1.442695, %v1585_v26  ;;  %v1572_v51 = vsub.f32 %v1500_v39, %v1539_v30  ;;  %v1580_v11 = vsub.f32 %v1508_v47, %v1539_v30  ;;  %v1465_v60 = vld [vmem:[#allocation1] sm:$0xff] }
 0x3a6   : > { %v2053_v48 = vpop.eup %2052  ;;  %v1622_v17 = vmul.f32 %v2051_v46, %v2927_v52  ;;  %1861 = vmatpush.xpose.msk.msra.mxu0 %vm495_vm3, %v2933_v55  ;;  %1868 = vmatmul.msk.f32.vlgmr.msra.gmra.mxu1 %vm495_vm3, %v1465_v60  ;;  %v1512_v39 = vld [vmem:[#allocation16 + $0xe] sm:$0x1] }
 0x3a7   : > { %v1630_v54 = vmul.f32 %v2053_v48, %v2927_v52  ;;  %2054 = vpow2.f32 %v1600_v21  ;;  %v1590_v57 = vmul.f32 1.442695, %v1572_v51  ;;  %v1606_v58 = vmul.f32 1.442695, %v1580_v11 }
 0x3a8   : > { %1638 = vst.msk [vmem:[#allocation16 + $0x4] sm:$0x1] %vm3076_vm5, %v1622_v17  ;;  %2056 = vpow2.f32 %v1616_v49 }
 0x3a9   : > { %1646 = vst.msk [vmem:[#allocation16 + $0xc] sm:$0x1] %vm3077_vm2, %v1630_v54  ;;  %2058 = vpow2.f32 %v1590_v57  ;;  %v1525_v1 = vpop.permute.xlu1 %1524 }
 0x3aa   : > { %2060 = vpow2.f32 %v1606_v58  ;;  %v1555_v42 = vpop.permute.xlu0 %1554  ;;  %v1527_v43 = vperm.slane %v1525_v1, 0  ;;  %1862 = vmatpush.xpose.msk.msra.mxu0 %vm495_vm3, %v1404_v18 }
 0x3ab   : > { %v1557_v52 = vperm.slane %v1555_v42, 0 }
 0x3ac   : > { %v1570_v10 = vsub.f32 %v1498_v63, %v1527_v43  ;;  %v1578_v41 = vsub.f32 %v1506_v0, %v1527_v43 }
 0x3ad   : > { %v2055_v2 = vpop.eup %2054  ;;  %v1575_v4 = vsub.f32 %v1503_v61, %v1557_v52  ;;  %v1583_v5 = vsub.f32 %v1511_v62, %v1557_v52  ;;  %1863 = vmatmul.msk.f32.vlgmr.msra.gmra.mxu0 %vm495_vm3, %v1398_v8 }
 0x3ae   : > { %v2057_v40 = vpop.eup %2056  ;;  %v1625_v55 = vmul.f32 %v2055_v2, %v2940_v9  ;;  %v1586_v50 = vmul.f32 1.442695, %v1570_v10  ;;  %v1602_v18 = vmul.f32 1.442695, %v1578_v41 }
 0x3af   : > { %v2059_v56 = vpop.eup %2058  ;;  %v1633_v34 = vmul.f32 %v2057_v40, %v2940_v9  ;;  %v1596_v3 = vmul.f32 1.442695, %v1575_v4  ;;  %v1612_v13 = vmul.f32 1.442695, %v1583_v5  ;;  %v1501_v9 = vld [vmem:[#allocation16 + $0x3] sm:$0x1] }
 0x3b0   : > { %v2061_v6 = vpop.eup %2060  ;;  %1641 = vst.msk [vmem:[#allocation16 + $0x7] sm:$0x1] %vm3078_vm6, %v1625_v55  ;;  %v1620_v12 = vmul.f32 %v2059_v56, %v2938_v7 }
 0x3b1   : > { %1649 = vst.msk [vmem:[#allocation16 + $0xf] sm:$0x1] %vm3079_vm7, %v1633_v34  ;;  %v1628_v15 = vmul.f32 %v2061_v6, %v2938_v7  ;;  %2062 = vpow2.f32 %v1596_v3  ;;  %v1543_v23 = vpop.permute.xlu1 %1542 }
 0x3b2   : > { %1636 = vst.msk [vmem:[#allocation16 + $0x2] sm:$0x1] %vm3080_vm8, %v1620_v12  ;;  %2064 = vpow2.f32 %v1612_v13  ;;  %v1545_v24 = vperm.slane %v1543_v23, 0 }
 0x3b3   : > { %1644 = vst.msk [vmem:[#allocation16 + $0xa] sm:$0x1] %vm3081_vm9, %v1628_v15  ;;  %2066 = vpow2.f32 %v1586_v50 }
 0x3b4   : > { %2068 = vpow2.f32 %v1602_v18  ;;  %v1573_v27 = vsub.f32 %v1501_v9, %v1545_v24  ;;  %v1581_v29 = vsub.f32 %v1509_v38, %v1545_v24 }
 0x3b6   : > { %v1592_v16 = vmul.f32 1.442695, %v1573_v27  ;;  %v1608_v35 = vmul.f32 1.442695, %v1581_v29 }
 0x3b7   : > { %v2063_v25 = vpop.eup %2062 }
 0x3b8   : > { %v2065_v31 = vpop.eup %2064  ;;  %v1623_v7 = vmul.f32 %v2063_v25, %v2944_v32  ;;  %2070 = vpow2.f32 %v1592_v16 }
 0x3b9   : > { %v2067_v33 = vpop.eup %2066  ;;  %v1631_v44 = vmul.f32 %v2065_v31, %v2944_v32  ;;  %2072 = vpow2.f32 %v1608_v35  ;;  %v1561_v47 = vpop.permute.xlu1 %1560 }
 0x3ba   : > { %v2069_v59 = vpop.eup %2068  ;;  %v1618_v36 = vmul.f32 %v2067_v33, %v2935_v28  ;;  %1639 = vst.msk [vmem:[#allocation16 + $0x5] sm:$0x1] %vm3082_vm11, %v1623_v7  ;;  %v1563_v32 = vperm.slane %v1561_v47, 0 }
 0x3bb   : > { %v1626_v37 = vmul.f32 %v2069_v59, %v2935_v28  ;;  %1647 = vst.msk [vmem:[#allocation16 + $0xd] sm:$0x1] %vm3083_vm12, %v1631_v44 }
 0x3bc   : > { %1634 = vst.msk [vmem:[#allocation16] sm:$0x1] %vm3084_vm13, %v1618_v36  ;;  %v1576_v22 = vsub.f32 %v1504_v53, %v1563_v32  ;;  %v1584_v45 = vsub.f32 %v1512_v39, %v1563_v32 }
 0x3bd   : > { %1642 = vst.msk [vmem:[#allocation16 + $0x8] sm:$0x1] %vm3085_vm14, %v1626_v37 }
 0x3be   : > { %v2071_v26 = vpop.eup %2070  ;;  %v1598_v30 = vmul.f32 1.442695, %v1576_v22  ;;  %v1614_v14 = vmul.f32 1.442695, %v1584_v45 }
 0x3bf   : > { %v2073_v46 = vpop.eup %2072  ;;  %v1621_v28 = vmul.f32 %v2071_v26, %v2923_v20 }
 0x3c0   : > { %v1629_v21 = vmul.f32 %v2073_v46, %v2923_v20  ;;  %2074 = vpow2.f32 %v1598_v30 }
 0x3c1   : > { %1637 = vst.msk [vmem:[#allocation16 + $0x3] sm:$0x1] %vm3086_vm15, %v1621_v28  ;;  %2076 = vpow2.f32 %v1614_v14 }
 0x3c2   : > { %1645 = vst.msk [vmem:[#allocation16 + $0xb] sm:$0x1] %vm3087_vm0, %v1629_v21 }
 0x3c6   : > { %v2075_v49 = vpop.eup %2074 }
 0x3c7   : > { %v2077_v51 = vpop.eup %2076  ;;  %v1624_v11 = vmul.f32 %v2075_v49, %v2930_v19 }
 0x3c8   : > { %v1632_v48 = vmul.f32 %v2077_v51, %v2930_v19 }
 0x3c9   : > { %1640 = vst.msk [vmem:[#allocation16 + $0x6] sm:$0x1] %vm3088_vm10, %v1624_v11 }
 0x3ca   : > { %1648 = vst.msk [vmem:[#allocation16 + $0xe] sm:$0x1] %vm3089_vm1, %v1632_v48 }
 0x423   : > { %v1493_v17 = vpop.f32.mrf.mxu1 }
 0x42a   : > { %v1439_v54 = vpop.f32.mrf.mxu0 }
 0x42b   : > { %v1494_v57 = vadd.f32 %v1493_v17, %v1439_v54 }
 0x42d   : > { %2078 = vtanh.f32 %v1494_v57 }
 0x433   : > { %v2079_v20 = vpop.eup %2078 }
 0x434   : > { %1497 = vst.msk [vmem:[#allocation15] sm:$0xff] %vm495_vm3, %v2079_v20 }
 0x435 PF: > { %p1923_p3 = scmp.eq.s32.totalorder %s2435_s27, 1  ;;  %s1660_s29 = sshll.u32 %s3026_s5, 4  ;;  %s1661_s29 = int_to_ptr.hbm [resolvable:$true] %s1660_s29 }
 0x436   : > { %s2367_s18 = smov [#allocation15]   ;;  %s2368_s13 = smov [#allocation16]  }
 0x437   : > { %s1658_s3 = sshll.u32 %s2367_s18, 4  ;;  %s1671_s20 = sshll.u32 %s2368_s13, 4  ;;  %s1659_s3 = int_to_ptr.vmem [resolvable:$true] %s1658_s3  ;;  %s1672_s20 = int_to_ptr.vmem [resolvable:$true] %s1671_s20 }
 0x438   : > { %1892 = dma.vmem_to_hbm [thread:$0]  (%p1923_p3), %s1659_s3, 128, %s1661_s29, [#allocation8]  }
 0x439   : > { %s1673_s14 = sshll.u32 %s3027_s6, 4  ;;  %s2369_s9 = smov 16   ;;  %s1674_s14 = int_to_ptr.hbm [resolvable:$true] %s1673_s14 }
 0x43a   : > { %s2370_s12 = smov 1  }
 0x43b   : > { %1894 = dma.vmem_to_hbm [thread:$0]  (%p1923_p3), %s1672_s20, 256, %s1674_s14, [#allocation17], %s2369_s9, %s2369_s9, %s2370_s12  }
 0x43c   : > { %2323 = dma.done.wait (%p1923_p3), [#allocation8], 128  }
 0x43d   : > { %2325 = vsyncadd (%p1923_p3), [#allocation8], 4294967168 }
 0x43e   : > { %2327 = dma.done.wait (%p1923_p3), [#allocation17], 256  }
 0x43f   : > { %2329 = vsyncadd (%p1923_p3), [#allocation17], 4294967040 }
 0x440 PF: > { %s3090_s16 = sld [smem:[#allocation24_spill]]  ;;  %s3094_s21 = smov %s2336_s22 }
 0x441   : > { %s3091_s23 = sld [smem:[#allocation23_spill]]  ;;  %s3097_s24 = smov %s2348_s25 }
 0x442   : > { %s3092_s11 = sld [smem:[#allocation26_spill]] }
 0x443   : > { %s3093_s19 = sld [smem:[#allocation25_spill]] }
 0x446   : > { %s24_s26 = sadd.s32 1, %s3090_s16  }
 0x447   : > { %p21_p4 = scmp.ge.s32.totalorder %s24_s26, 4   ;;  %s3095_s22 = smov %s3091_s23 }
 0x448   : > { %s3096_s23 = smov %s3092_s11 }
 0x449   : > { %s3098_s25 = smov %s3093_s19  ;;  %23 = sbr.rel (!%p21_p4) target bundleno = 11 (0xb), region = 128 }
 0x44e   :  { %1695 = vsyncpa [#allocation7], 1 }
 0x44f   :  { %1697 = vsyncpa [#allocation7 + $0x1], 1 }
 0x450   :  { %1698 = vsyncpa [#allocation10], 1 }
 0x451   :  { %1700 = vsyncpa [#allocation10 + $0x1], 1 }
 0x452   :  { %1701 = vsyncpa [#allocation13], 1 }
 0x453   :  { %1702 = vsyncpa [#allocation8], 1 }
 0x454   :  { %1704 = vsyncpa [#allocation8 + $0x1], 1 }
 0x455   :  { %1705 = vsyncpa [#allocation17], 1 }

</bundles_post_ra>
